<compile_context>
chip_gen: v7x
topology: tpu7x:2x2x1
jax: 0.10.0
libtpu: 0.0.40
codegen_flags: <defaults>
</compile_context>

<pallas_src>
import functools

import jax
import jax.numpy as jnp
from jax.experimental import pallas as pl
from jax.experimental.pallas import tpu as pltpu


_LRELU_SLOPE = 0.2
_BN_EPS = 1e-5
_LANE = 128
_MAX_ROW_TILE = 256          # matmul row tile
_MAX_K_TILE = 512            # contraction tile (extra grid axis + f32 accumulator)
_MAX_ELEM_ROW_TILE = 1024    # elementwise (BN affine + LReLU) row tile
_VMEM_LIMIT_BYTES = 32 * 1024 * 1024


def _round_up(x, m):
    return ((x + m - 1) // m) * m


def _row_tiling(m):
    """Row tile (multiple of 8) and the padded row count it divides."""
    m8 = _round_up(m, 8)
    tm = min(_MAX_ROW_TILE, m8)
    return tm, _round_up(m, tm)


def _k_tiling(k):
    """Padded contraction length (multiple of 128) and K tile that divides it."""
    k_pad = _round_up(k, _LANE)
    if k_pad <= _MAX_K_TILE:
        return k_pad, k_pad
    return _round_up(k, _MAX_K_TILE), _MAX_K_TILE


def _elem_row_tile(m_pad):
    """Largest row tile (<= _MAX_ELEM_ROW_TILE, multiple of 8) dividing m_pad."""
    t = min(m_pad, _MAX_ELEM_ROW_TILE)
    while m_pad % t:
        t -= 8
    return t


# ---------------------------------------------------------------------------
# Pallas kernels
# ---------------------------------------------------------------------------
def _conv_matmul_kernel(x_ref, w_ref, scale_ref, shift_ref, o_ref, *rest,
                        apply_lrelu, emit_stats, neg_slope):
    """K-tiled matmul with f32 VMEM accumulator.

    Epilogue (last K step): y = acc * scale + shift; optionally emit per-row-tile
    partial sum / sum-of-squares (fused BatchNorm statistics); optional LeakyReLU;
    cast + lane-dense store.
    """
    if emit_stats:
        sum_ref, ssq_ref, acc_ref = rest
    else:
        (acc_ref,) = rest

    @pl.when(pl.program_id(1) == 0)
    def _():
        acc_ref[...] = jnp.zeros_like(acc_ref)

    acc_ref[...] += jnp.dot(x_ref[...], w_ref[...],
                            preferred_element_type=jnp.float32)

    @pl.when(pl.program_id(1) == pl.num_programs(1) - 1)
    def _():
        y = acc_ref[...] * scale_ref[...] + shift_ref[...]
        if emit_stats:
            r, c = y.shape
            y3 = y.reshape(r // 8, 8, c)
            sum_ref[...] = jnp.sum(y3, axis=0)
            ssq_ref[...] = jnp.sum(y3 * y3, axis=0)
        if apply_lrelu:
            y = jnp.maximum(y, neg_slope * y)
        o_ref[...] = y.astype(o_ref.dtype)


def _affine_lrelu_kernel(x_ref, scale_ref, shift_ref, o_ref, *, neg_slope):
    """o = leaky_relu(x * scale + shift)  (folded BatchNorm + activation)."""
    y = x_ref[...].astype(jnp.float32) * scale_ref[...] + shift_ref[...]
    o_ref[...] = jnp.maximum(y, neg_slope * y).astype(o_ref.dtype)


# ---------------------------------------------------------------------------
# Wrappers
# ---------------------------------------------------------------------------
def _extract_patches_nhwc(x, ksize, stride, pad):
    """(N, H, W, C) -> (N*Hout*Wout, k*k*C); K ordered (kh, kw, c), channels-last."""
    n, h, w, c = x.shape
    xp = jnp.pad(x, ((0, 0), (pad, pad), (pad, pad), (0, 0)))
    h_out = (h + 2 * pad - ksize) // stride + 1
    w_out = (w + 2 * pad - ksize) // stride + 1
    cols = []
    for i in range(ksize):
        for j in range(ksize):
            cols.append(xp[:, i:i + stride * (h_out - 1) + 1:stride,
                           j:j + stride * (w_out - 1) + 1:stride, :])
    patches = jnp.concatenate(cols, axis=-1)              # (n, ho, wo, k*k*c)
    return patches.reshape(n * h_out * w_out, ksize * ksize * c), (n, h_out, w_out)


def conv2d_pallas(x_nhwc, w_oihw, bias, stride, *, apply_lrelu, emit_stats,
                  out_dtype=jnp.bfloat16):
    """4x4 conv (padding=1) as bf16 im2col + K-tiled MXU matmul (fused epilogue)."""
    cout, cin, kh, kw = w_oihw.shape
    patches, (n, h_out, w_out) = _extract_patches_nhwc(
        x_nhwc.astype(jnp.bfloat16), kh, stride, pad=1)
    m, k = patches.shape

    tm, m_pad = _row_tiling(m)
    k_pad, tk = _k_tiling(k)
    cout_pad = _round_up(cout, _LANE)
    n_row_tiles = m_pad // tm
    n_k_tiles = k_pad // tk

    if (m_pad, k_pad) != (m, k):
        patches = jnp.pad(patches, ((0, m_pad - m), (0, k_pad - k)))

    # Weight in (kh, kw, cin, cout) order to match the patch K ordering.
    wmat = (w_oihw.transpose(2, 3, 1, 0)
            .reshape(kh * kw * cin, cout).astype(jnp.bfloat16))
    if (k_pad, cout_pad) != (k, cout):
        wmat = jnp.pad(wmat, ((0, k_pad - k), (0, cout_pad - cout)))

    scale = jnp.ones((1, cout_pad), jnp.float32)
    b = bias if bias is not None else jnp.zeros((cout,), jnp.float32)
    shift = jnp.pad(b.astype(jnp.float32), (0, cout_pad - cout)).reshape(1, cout_pad)

    kernel = functools.partial(_conv_matmul_kernel, apply_lrelu=apply_lrelu,
                               emit_stats=emit_stats, neg_slope=_LRELU_SLOPE)

    in_specs = [
        pl.BlockSpec((tm, tk), lambda i, kk: (i, kk)),         # patch row/K tile
        pl.BlockSpec((tk, cout_pad), lambda i, kk: (kk, 0)),   # weight K slab
        pl.BlockSpec((1, cout_pad), lambda i, kk: (0, 0)),     # scale
        pl.BlockSpec((1, cout_pad), lambda i, kk: (0, 0)),     # shift
    ]
    out_block = pl.BlockSpec((tm, cout_pad), lambda i, kk: (i, 0))
    if emit_stats:
        stat_block = pl.BlockSpec((8, cout_pad), lambda i, kk: (i, 0))
        out_shape = (jax.ShapeDtypeStruct((m_pad, cout_pad), out_dtype),
                     jax.ShapeDtypeStruct((n_row_tiles * 8, cout_pad), jnp.float32),
                     jax.ShapeDtypeStruct((n_row_tiles * 8, cout_pad), jnp.float32))
        out_specs = (out_block, stat_block, stat_block)
    else:
        out_shape = jax.ShapeDtypeStruct((m_pad, cout_pad), out_dtype)
        out_specs = out_block

    result = pl.pallas_call(
        kernel,
        out_shape=out_shape,
        grid=(n_row_tiles, n_k_tiles),
        in_specs=in_specs,
        out_specs=out_specs,
        scratch_shapes=[pltpu.VMEM((tm, cout_pad), jnp.float32)],
        compiler_params=pltpu.CompilerParams(
            dimension_semantics=("parallel", "arbitrary"),
            vmem_limit_bytes=_VMEM_LIMIT_BYTES),
    )(patches, wmat, scale, shift)

    meta = (n, h_out, w_out, cout, m)
    return result, meta


def batchnorm_lrelu_pallas(y_pad, psum, pssq, m_valid, cout, gamma, beta):
    """Fold training-mode BatchNorm (from fused partial stats) + LeakyReLU."""
    m_pad, cout_pad = y_pad.shape
    s = jnp.sum(psum, axis=0)[:cout]
    sq = jnp.sum(pssq, axis=0)[:cout]
    mean = s / m_valid
    var = jnp.maximum(sq / m_valid - mean * mean, 0.0)     # biased, like torch BN
    inv = gamma * jax.lax.rsqrt(var + _BN_EPS)
    scale = jnp.pad(inv, (0, cout_pad - cout)).reshape(1, cout_pad).astype(jnp.float32)
    shift = jnp.pad(beta - mean * inv,
                    (0, cout_pad - cout)).reshape(1, cout_pad).astype(jnp.float32)

    tm = _elem_row_tile(m_pad)
    kernel = functools.partial(_affine_lrelu_kernel, neg_slope=_LRELU_SLOPE)
    return pl.pallas_call(
        kernel,
        out_shape=jax.ShapeDtypeStruct((m_pad, cout_pad), jnp.bfloat16),
        grid=(m_pad // tm,),
        in_specs=[
            pl.BlockSpec((tm, cout_pad), lambda i: (i, 0)),
            pl.BlockSpec((1, cout_pad), lambda i: (0, 0)),
            pl.BlockSpec((1, cout_pad), lambda i: (0, 0)),
        ],
        out_specs=pl.BlockSpec((tm, cout_pad), lambda i: (i, 0)),
        compiler_params=pltpu.CompilerParams(
            dimension_semantics=("parallel",),
            vmem_limit_bytes=_VMEM_LIMIT_BYTES),
    )(y_pad, scale, shift)


def _rows_to_nhwc(y_pad, meta):
    n, h_out, w_out, cout, m = meta
    return y_pad[:m, :cout].reshape(n, h_out, w_out, cout)


# ---------------------------------------------------------------------------
# Model: parameters + forward (mirrors the torch NLayerDiscriminator sequence)
# ---------------------------------------------------------------------------
def init_discriminator_params(key, input_nc, ndf=64, n_layers=3):
    def conv_init(k, cout, cin):
        kw_, kb_ = jax.random.split(k)
        w = jax.random.normal(kw_, (cout, cin, 4, 4), jnp.float32) / jnp.sqrt(cin * 16.0)
        b = jax.random.normal(kb_, (cout,), jnp.float32) * 0.01
        return w, b

    keys = jax.random.split(key, n_layers + 2)
    params = {}

    w0, b0 = conv_init(keys[0], ndf, input_nc)                 # stride 2, bias, LReLU
    params["first"] = {"w": w0, "b": b0}

    mids = []
    nf_mult = 1
    for n in range(1, n_layers):                               # stride-2 BN blocks
        nf_prev, nf_mult = nf_mult, min(2 ** n, 8)
        w, _ = conv_init(keys[n], ndf * nf_mult, ndf * nf_prev)   # bias=False (BN)
        mids.append({"w": w, "stride": 2,
                     "gamma": jnp.ones((ndf * nf_mult,), jnp.float32),
                     "beta": jnp.zeros((ndf * nf_mult,), jnp.float32)})
    nf_prev, nf_mult = nf_mult, min(2 ** n_layers, 8)          # stride-1 BN block
    w, _ = conv_init(keys[n_layers], ndf * nf_mult, ndf * nf_prev)
    mids.append({"w": w, "stride": 1,
                 "gamma": jnp.ones((ndf * nf_mult,), jnp.float32),
                 "beta": jnp.zeros((ndf * nf_mult,), jnp.float32)})
    params["mid"] = mids

    wf, bf = conv_init(keys[n_layers + 1], 1, ndf * nf_mult)   # final 1-channel conv
    params["final"] = {"w": wf, "b": bf}
    return params


def discriminator_forward(params, x_nchw):
    # Channels-last, bf16 activations throughout; back to NCHW only at the end.
    x = jnp.transpose(x_nchw, (0, 2, 3, 1)).astype(jnp.bfloat16)

    # conv(s=2) + bias + LeakyReLU fused in the matmul epilogue
    y, meta = conv2d_pallas(x, params["first"]["w"], params["first"]["b"], stride=2,
                            apply_lrelu=True, emit_stats=False, out_dtype=jnp.bfloat16)
    x = _rows_to_nhwc(y, meta)

    # conv (no bias, partial BN stats fused) -> BN(batch stats) affine + LeakyReLU
    for layer in params["mid"]:
        (y, psum, pssq), meta = conv2d_pallas(
            x, layer["w"], None, stride=layer["stride"],
            apply_lrelu=False, emit_stats=True, out_dtype=jnp.bfloat16)
        y = batchnorm_lrelu_pallas(y, psum, pssq, meta[-1], layer["w"].shape[0],
                                   layer["gamma"], layer["beta"])
        x = _rows_to_nhwc(y, meta)

    # final conv(s=1) with bias, no activation (use_sigmoid=False default)
    y, meta = conv2d_pallas(x, params["final"]["w"], params["final"]["b"], stride=1,
                            apply_lrelu=False, emit_stats=False, out_dtype=jnp.float32)
    n, h_out, w_out, cout, m = meta
    out = y[:m, :cout].reshape(n, h_out, w_out, cout)
    return jnp.transpose(out, (0, 3, 1, 2))


# ---------------------------------------------------------------------------
# Pure-JAX reference (f32, HIGHEST precision)
# ---------------------------------------------------------------------------
def _ref_forward(params, x):
    def conv(xx, w, b, stride):
        y = jax.lax.conv_general_dilated(
            xx, w, (stride, stride), ((1, 1), (1, 1)),
            dimension_numbers=("NCHW", "OIHW", "NCHW"),
            precision=jax.lax.Precision.HIGHEST)
        return y if b is None else y + b[None, :, None, None]

    def bn(xx, gamma, beta):
        mean = jnp.mean(xx, axis=(0, 2, 3), keepdims=True)
        var = jnp.mean(jnp.square(xx - mean), axis=(0, 2, 3), keepdims=True)
        xhat = (xx - mean) * jax.lax.rsqrt(var + _BN_EPS)
        return xhat * gamma[None, :, None, None] + beta[None, :, None, None]

    def lrelu(v):
        return jnp.where(v >= 0, v, _LRELU_SLOPE * v)

    x = lrelu(conv(x, params["first"]["w"], params["first"]["b"], 2))
    for layer in params["mid"]:
        x = lrelu(bn(conv(x, layer["w"], None, layer["stride"]),
                     layer["gamma"], layer["beta"]))
    return conv(x, params["final"]["w"], params["final"]["b"], 1)


if __name__ == "__main__":
    key = jax.random.PRNGKey(0)
    k_param, k_x = jax.random.split(key)

    # Small-but-valid config: n_layers=3 needs spatial >= 24 for a non-empty output.
    input_nc, ndf, n_layers = 3, 16, 3
    params = init_discriminator_params(k_param, input_nc, ndf=ndf, n_layers=n_layers)

    x = jax.random.normal(k_x, (2, input_nc, 32, 32), jnp.float32)

    fwd = jax.jit(lambda xx: discriminator_forward(params, xx))
    out = jax.block_until_ready(fwd(x))

    ref = _ref_forward(params, x)
    assert out.shape == ref.shape, (out.shape, ref.shape)
    # bf16 MXU operands with f32 accumulation vs f32 HIGHEST reference.
    assert bool(jnp.allclose(out, ref, rtol=2e-2, atol=2e-2)), "mismatch vs reference"

    print("KERNEL_OK")
</pallas_src>

<mosaic_0001>
module attributes {stable_mosaic.version = 11 : i64} {
  func.func @_conv_matmul_kernel(%arg0: i32, %arg1: i32, %arg2: memref<256x128xbf16, #tpu.memory_space<vmem>>, %arg3: memref<128x128xbf16, #tpu.memory_space<vmem>>, %arg4: memref<1x128xf32, #tpu.memory_space<vmem>>, %arg5: memref<1x128xf32, #tpu.memory_space<vmem>>, %arg6: memref<256x128xbf16, #tpu.memory_space<vmem>>, %arg7: memref<256x128xf32, #tpu.memory_space<vmem>>) attributes {dimension_semantics = [#tpu.dimension_semantics<parallel>, #tpu.dimension_semantics<arbitrary>], iteration_bounds = array<i64: 2, 1>, scalar_prefetch = 0 : i64, scratch_operands = 1 : i64, tpu.core_type = #tpu.core_type<tc>, window_params = [{transform_indices = @transform_0, window_bounds = array<i64: 256, 128>}, {transform_indices = @transform_1, window_bounds = array<i64: 128, 128>}, {pipeline_mode = #tpu.pipeline_mode<synchronous>, transform_indices = @transform_2, window_bounds = array<i64: 1, 128>}, {pipeline_mode = #tpu.pipeline_mode<synchronous>, transform_indices = @transform_3, window_bounds = array<i64: 1, 128>}, {transform_indices = @transform_4, window_bounds = array<i64: 256, 128>}]} {
    %c0_i32 = arith.constant 0 : i32
    %0 = arith.cmpi eq, %arg1, %c0_i32 : i32
    %1 = arith.extui %0 : i1 to i32
    %c0_i32_0 = arith.constant 0 : i32
    %2 = arith.cmpi ne, %1, %c0_i32_0 : i32
    scf.if %2 {
      %cst_10 = arith.constant 0.000000e+00 : f32
      %12 = vector.broadcast %cst_10 : f32 to vector<256x128xf32>
      %c0_11 = arith.constant 0 : index
      %c0_12 = arith.constant 0 : index
      %13 = vector.load %arg7[%c0_11, %c0_12] : memref<256x128xf32, #tpu.memory_space<vmem>>, vector<256x128xf32>
      tpu.vector_store %arg7[%c0_11, %c0_12], %12 {strides = array<i32>} : memref<256x128xf32, #tpu.memory_space<vmem>>, vector<256x128xf32>,
    } else {
    }
    %c0 = arith.constant 0 : index
    %c0_1 = arith.constant 0 : index
    %3 = vector.load %arg7[%c0, %c0_1] : memref<256x128xf32, #tpu.memory_space<vmem>>, vector<256x128xf32>
    %c0_2 = arith.constant 0 : index
    %c0_3 = arith.constant 0 : index
    %4 = vector.load %arg2[%c0_2, %c0_3] : memref<256x128xbf16, #tpu.memory_space<vmem>>, vector<256x128xbf16>
    %c0_4 = arith.constant 0 : index
    %c0_5 = arith.constant 0 : index
    %5 = vector.load %arg3[%c0_4, %c0_5] : memref<128x128xbf16, #tpu.memory_space<vmem>>, vector<128x128xbf16>
    %cst = arith.constant dense<0.000000e+00> : vector<256x128xf32>
    %6 = tpu.matmul %4, %5, %cst {dimension_numbers = #tpu.dot_dimension_numbers<[1], [0], [0], [1], [0, 0, 1, 1], [], []>} : vector<256x128xbf16>, vector<128x128xbf16>, vector<256x128xf32> -> vector<256x128xf32>
    %7 = arith.addf %3, %6 : vector<256x128xf32>
    %c0_6 = arith.constant 0 : index
    %c0_7 = arith.constant 0 : index
    %8 = vector.load %arg7[%c0_6, %c0_7] : memref<256x128xf32, #tpu.memory_space<vmem>>, vector<256x128xf32>
    tpu.vector_store %arg7[%c0_6, %c0_7], %7 {strides = array<i32>} : memref<256x128xf32, #tpu.memory_space<vmem>>, vector<256x128xf32>,
    %c0_i32_8 = arith.constant 0 : i32
    %9 = arith.cmpi eq, %arg1, %c0_i32_8 : i32
    %10 = arith.extui %9 : i1 to i32
    %c0_i32_9 = arith.constant 0 : i32
    %11 = arith.cmpi ne, %10, %c0_i32_9 : i32
    scf.if %11 {
      %c0_10 = arith.constant 0 : index
      %c0_11 = arith.constant 0 : index
      %12 = vector.load %arg7[%c0_10, %c0_11] : memref<256x128xf32, #tpu.memory_space<vmem>>, vector<256x128xf32>
      %c0_12 = arith.constant 0 : index
      %c0_13 = arith.constant 0 : index
      %13 = vector.load %arg4[%c0_12, %c0_13] : memref<1x128xf32, #tpu.memory_space<vmem>>, vector<1x128xf32>
      %14 = vector.broadcast %13 : vector<1x128xf32> to vector<256x128xf32>
      %15 = arith.mulf %12, %14 : vector<256x128xf32>
      %c0_14 = arith.constant 0 : index
      %c0_15 = arith.constant 0 : index
      %16 = vector.load %arg5[%c0_14, %c0_15] : memref<1x128xf32, #tpu.memory_space<vmem>>, vector<1x128xf32>
      %17 = vector.broadcast %16 : vector<1x128xf32> to vector<256x128xf32>
      %18 = arith.addf %15, %17 : vector<256x128xf32>
      %cst_16 = arith.constant 2.000000e-01 : f32
      %19 = vector.broadcast %cst_16 : f32 to vector<256x128xf32>
      %20 = arith.mulf %19, %18 : vector<256x128xf32>
      %21 = arith.maximumf %18, %20 : vector<256x128xf32>
      %22 = arith.truncf %21 : vector<256x128xf32> to vector<256x128xbf16>
      %c0_17 = arith.constant 0 : index
      %c0_18 = arith.constant 0 : index
      %23 = vector.load %arg6[%c0_17, %c0_18] : memref<256x128xbf16, #tpu.memory_space<vmem>>, vector<256x128xbf16>
      tpu.vector_store %arg6[%c0_17, %c0_18], %22 {strides = array<i32>} : memref<256x128xbf16, #tpu.memory_space<vmem>>, vector<256x128xbf16>,
    } else {
    }
    return
  }
  func.func @transform_0(%arg0: i32, %arg1: i32) -> (i32, i32) {
    %c0_i32 = arith.constant 0 : i32
    return %arg0, %arg1 : i32, i32
  }
  func.func @transform_1(%arg0: i32, %arg1: i32) -> (i32, i32) {
    %c0_i32 = arith.constant 0 : i32
    %c0_i32_0 = arith.constant 0 : i32
    return %arg1, %c0_i32 : i32, i32
  }
  func.func @transform_2(%arg0: i32, %arg1: i32) -> (i32, i32) {
    %c0_i32 = arith.constant 0 : i32
    %c0_i32_0 = arith.constant 0 : i32
    %c0_i32_1 = arith.constant 0 : i32
    return %c0_i32, %c0_i32_0 : i32, i32
  }
  func.func @transform_3(%arg0: i32, %arg1: i32) -> (i32, i32) {
    %c0_i32 = arith.constant 0 : i32
    %c0_i32_0 = arith.constant 0 : i32
    %c0_i32_1 = arith.constant 0 : i32
    return %c0_i32, %c0_i32_0 : i32, i32
  }
  func.func @transform_4(%arg0: i32, %arg1: i32) -> (i32, i32) {
    %c0_i32 = arith.constant 0 : i32
    %c0_i32_0 = arith.constant 0 : i32
    return %arg0, %c0_i32 : i32, i32
  }
}

module attributes {stable_mosaic.version = 11 : i64} {
  func.func @_affine_lrelu_kernel(%arg0: i32, %arg1: memref<128x128xbf16, #tpu.memory_space<vmem>>, %arg2: memref<1x128xf32, #tpu.memory_space<vmem>>, %arg3: memref<1x128xf32, #tpu.memory_space<vmem>>, %arg4: memref<128x128xbf16, #tpu.memory_space<vmem>>) attributes {dimension_semantics = [#tpu.dimension_semantics<parallel>], iteration_bounds = array<i64: 1>, scalar_prefetch = 0 : i64, scratch_operands = 0 : i64, tpu.core_type = #tpu.core_type<tc>, window_params = [{transform_indices = @transform_0, window_bounds = array<i64: 128, 128>}, {pipeline_mode = #tpu.pipeline_mode<synchronous>, transform_indices = @transform_1, window_bounds = array<i64: 1, 128>}, {pipeline_mode = #tpu.pipeline_mode<synchronous>, transform_indices = @transform_2, window_bounds = array<i64: 1, 128>}, {transform_indices = @transform_3, window_bounds = array<i64: 128, 128>}]} {
    %c0 = arith.constant 0 : index
    %c0_0 = arith.constant 0 : index
    %0 = vector.load %arg1[%c0, %c0_0] : memref<128x128xbf16, #tpu.memory_space<vmem>>, vector<128x128xbf16>
    %1 = arith.extf %0 : vector<128x128xbf16> to vector<128x128xf32>
    %c0_1 = arith.constant 0 : index
    %c0_2 = arith.constant 0 : index
    %2 = vector.load %arg2[%c0_1, %c0_2] : memref<1x128xf32, #tpu.memory_space<vmem>>, vector<1x128xf32>
    %3 = vector.broadcast %2 : vector<1x128xf32> to vector<128x128xf32>
    %4 = arith.mulf %1, %3 : vector<128x128xf32>
    %c0_3 = arith.constant 0 : index
    %c0_4 = arith.constant 0 : index
    %5 = vector.load %arg3[%c0_3, %c0_4] : memref<1x128xf32, #tpu.memory_space<vmem>>, vector<1x128xf32>
    %6 = vector.broadcast %5 : vector<1x128xf32> to vector<128x128xf32>
    %7 = arith.addf %4, %6 : vector<128x128xf32>
    %cst = arith.constant 2.000000e-01 : f32
    %8 = vector.broadcast %cst : f32 to vector<128x128xf32>
    %9 = arith.mulf %8, %7 : vector<128x128xf32>
    %10 = arith.maximumf %7, %9 : vector<128x128xf32>
    %11 = arith.truncf %10 : vector<128x128xf32> to vector<128x128xbf16>
    %c0_5 = arith.constant 0 : index
    %c0_6 = arith.constant 0 : index
    %12 = vector.load %arg4[%c0_5, %c0_6] : memref<128x128xbf16, #tpu.memory_space<vmem>>, vector<128x128xbf16>
    tpu.vector_store %arg4[%c0_5, %c0_6], %11 {strides = array<i32>} : memref<128x128xbf16, #tpu.memory_space<vmem>>, vector<128x128xbf16>,
    return
  }
  func.func @transform_0(%arg0: i32) -> (i32, i32) {
    %c0_i32 = arith.constant 0 : i32
    %c0_i32_0 = arith.constant 0 : i32
    return %arg0, %c0_i32 : i32, i32
  }
  func.func @transform_1(%arg0: i32) -> (i32, i32) {
    %c0_i32 = arith.constant 0 : i32
    %c0_i32_0 = arith.constant 0 : i32
    %c0_i32_1 = arith.constant 0 : i32
    return %c0_i32, %c0_i32_0 : i32, i32
  }
  func.func @transform_2(%arg0: i32) -> (i32, i32) {
    %c0_i32 = arith.constant 0 : i32
    %c0_i32_0 = arith.constant 0 : i32
    %c0_i32_1 = arith.constant 0 : i32
    return %c0_i32, %c0_i32_0 : i32, i32
  }
  func.func @transform_3(%arg0: i32) -> (i32, i32) {
    %c0_i32 = arith.constant 0 : i32
    %c0_i32_0 = arith.constant 0 : i32
    return %arg0, %c0_i32 : i32, i32
  }
}

module attributes {stable_mosaic.version = 11 : i64} {
  func.func @_conv_matmul_kernel(%arg0: i32, %arg1: i32, %arg2: memref<128x256xbf16, #tpu.memory_space<vmem>>, %arg3: memref<256x128xbf16, #tpu.memory_space<vmem>>, %arg4: memref<1x128xf32, #tpu.memory_space<vmem>>, %arg5: memref<1x128xf32, #tpu.memory_space<vmem>>, %arg6: memref<128x128xbf16, #tpu.memory_space<vmem>>, %arg7: memref<8x128xf32, #tpu.memory_space<vmem>>, %arg8: memref<8x128xf32, #tpu.memory_space<vmem>>, %arg9: memref<128x128xf32, #tpu.memory_space<vmem>>) attributes {dimension_semantics = [#tpu.dimension_semantics<parallel>, #tpu.dimension_semantics<arbitrary>], iteration_bounds = array<i64: 1, 1>, scalar_prefetch = 0 : i64, scratch_operands = 1 : i64, tpu.core_type = #tpu.core_type<tc>, window_params = [{transform_indices = @transform_0, window_bounds = array<i64: 128, 256>}, {transform_indices = @transform_1, window_bounds = array<i64: 256, 128>}, {pipeline_mode = #tpu.pipeline_mode<synchronous>, transform_indices = @transform_2, window_bounds = array<i64: 1, 128>}, {pipeline_mode = #tpu.pipeline_mode<synchronous>, transform_indices = @transform_3, window_bounds = array<i64: 1, 128>}, {transform_indices = @transform_4, window_bounds = array<i64: 128, 128>}, {transform_indices = @transform_5, window_bounds = array<i64: 8, 128>}, {transform_indices = @transform_6, window_bounds = array<i64: 8, 128>}]} {
    %c0_i32 = arith.constant 0 : i32
    %0 = arith.cmpi eq, %arg1, %c0_i32 : i32
    %1 = arith.extui %0 : i1 to i32
    %c0_i32_0 = arith.constant 0 : i32
    %2 = arith.cmpi ne, %1, %c0_i32_0 : i32
    scf.if %2 {
      %cst_10 = arith.constant 0.000000e+00 : f32
      %12 = vector.broadcast %cst_10 : f32 to vector<128x128xf32>
      %c0_11 = arith.constant 0 : index
      %c0_12 = arith.constant 0 : index
      %13 = vector.load %arg9[%c0_11, %c0_12] : memref<128x128xf32, #tpu.memory_space<vmem>>, vector<128x128xf32>
      tpu.vector_store %arg9[%c0_11, %c0_12], %12 {strides = array<i32>} : memref<128x128xf32, #tpu.memory_space<vmem>>, vector<128x128xf32>,
    } else {
    }
    %c0 = arith.constant 0 : index
    %c0_1 = arith.constant 0 : index
    %3 = vector.load %arg9[%c0, %c0_1] : memref<128x128xf32, #tpu.memory_space<vmem>>, vector<128x128xf32>
    %c0_2 = arith.constant 0 : index
    %c0_3 = arith.constant 0 : index
    %4 = vector.load %arg2[%c0_2, %c0_3] : memref<128x256xbf16, #tpu.memory_space<vmem>>, vector<128x256xbf16>
    %c0_4 = arith.constant 0 : index
    %c0_5 = arith.constant 0 : index
    %5 = vector.load %arg3[%c0_4, %c0_5] : memref<256x128xbf16, #tpu.memory_space<vmem>>, vector<256x128xbf16>
    %cst = arith.constant dense<0.000000e+00> : vector<128x128xf32>
    %6 = tpu.matmul %4, %5, %cst {dimension_numbers = #tpu.dot_dimension_numbers<[1], [0], [0], [1], [0, 0, 1, 1], [], []>} : vector<128x256xbf16>, vector<256x128xbf16>, vector<128x128xf32> -> vector<128x128xf32>
    %7 = arith.addf %3, %6 : vector<128x128xf32>
    %c0_6 = arith.constant 0 : index
    %c0_7 = arith.constant 0 : index
    %8 = vector.load %arg9[%c0_6, %c0_7] : memref<128x128xf32, #tpu.memory_space<vmem>>, vector<128x128xf32>
    tpu.vector_store %arg9[%c0_6, %c0_7], %7 {strides = array<i32>} : memref<128x128xf32, #tpu.memory_space<vmem>>, vector<128x128xf32>,
    %c0_i32_8 = arith.constant 0 : i32
    %9 = arith.cmpi eq, %arg1, %c0_i32_8 : i32
    %10 = arith.extui %9 : i1 to i32
    %c0_i32_9 = arith.constant 0 : i32
    %11 = arith.cmpi ne, %10, %c0_i32_9 : i32
    scf.if %11 {
      %c0_10 = arith.constant 0 : index
      %c0_11 = arith.constant 0 : index
      %12 = vector.load %arg9[%c0_10, %c0_11] : memref<128x128xf32, #tpu.memory_space<vmem>>, vector<128x128xf32>
      %c0_12 = arith.constant 0 : index
      %c0_13 = arith.constant 0 : index
      %13 = vector.load %arg4[%c0_12, %c0_13] : memref<1x128xf32, #tpu.memory_space<vmem>>, vector<1x128xf32>
      %14 = vector.broadcast %13 : vector<1x128xf32> to vector<128x128xf32>
      %15 = arith.mulf %12, %14 : vector<128x128xf32>
      %c0_14 = arith.constant 0 : index
      %c0_15 = arith.constant 0 : index
      %16 = vector.load %arg5[%c0_14, %c0_15] : memref<1x128xf32, #tpu.memory_space<vmem>>, vector<1x128xf32>
      %17 = vector.broadcast %16 : vector<1x128xf32> to vector<128x128xf32>
      %18 = arith.addf %15, %17 : vector<128x128xf32>
      %19 = vector.shape_cast %18 : vector<128x128xf32> to vector<16x8x128xf32>
      %cst_16 = arith.constant dense<0.000000e+00> : vector<8x128xf32>
      %20 = vector.multi_reduction <add>, %19, %cst_16 [0] : vector<16x8x128xf32> to vector<8x128xf32>
      %c0_17 = arith.constant 0 : index
      %c0_18 = arith.constant 0 : index
      %21 = vector.load %arg7[%c0_17, %c0_18] : memref<8x128xf32, #tpu.memory_space<vmem>>, vector<8x128xf32>
      tpu.vector_store %arg7[%c0_17, %c0_18], %20 {strides = array<i32>} : memref<8x128xf32, #tpu.memory_space<vmem>>, vector<8x128xf32>,
      %22 = arith.mulf %19, %19 : vector<16x8x128xf32>
      %cst_19 = arith.constant dense<0.000000e+00> : vector<8x128xf32>
      %23 = vector.multi_reduction <add>, %22, %cst_19 [0] : vector<16x8x128xf32> to vector<8x128xf32>
      %c0_20 = arith.constant 0 : index
      %c0_21 = arith.constant 0 : index
      %24 = vector.load %arg8[%c0_20, %c0_21] : memref<8x128xf32, #tpu.memory_space<vmem>>, vector<8x128xf32>
      tpu.vector_store %arg8[%c0_20, %c0_21], %23 {strides = array<i32>} : memref<8x128xf32, #tpu.memory_space<vmem>>, vector<8x128xf32>,
      %25 = arith.truncf %18 : vector<128x128xf32> to vector<128x128xbf16>
      %c0_22 = arith.constant 0 : index
      %c0_23 = arith.constant 0 : index
      %26 = vector.load %arg6[%c0_22, %c0_23] : memref<128x128xbf16, #tpu.memory_space<vmem>>, vector<128x128xbf16>
      tpu.vector_store %arg6[%c0_22, %c0_23], %25 {strides = array<i32>} : memref<128x128xbf16, #tpu.memory_space<vmem>>, vector<128x128xbf16>,
    } else {
    }
    return
  }
  func.func @transform_0(%arg0: i32, %arg1: i32) -> (i32, i32) {
    %c0_i32 = arith.constant 0 : i32
    return %arg0, %arg1 : i32, i32
  }
  func.func @transform_1(%arg0: i32, %arg1: i32) -> (i32, i32) {
    %c0_i32 = arith.constant 0 : i32
    %c0_i32_0 = arith.constant 0 : i32
    return %arg1, %c0_i32 : i32, i32
  }
  func.func @transform_2(%arg0: i32, %arg1: i32) -> (i32, i32) {
    %c0_i32 = arith.constant 0 : i32
    %c0_i32_0 = arith.constant 0 : i32
    %c0_i32_1 = arith.constant 0 : i32
    return %c0_i32, %c0_i32_0 : i32, i32
  }
  func.func @transform_3(%arg0: i32, %arg1: i32) -> (i32, i32) {
    %c0_i32 = arith.constant 0 : i32
    %c0_i32_0 = arith.constant 0 : i32
    %c0_i32_1 = arith.constant 0 : i32
    return %c0_i32, %c0_i32_0 : i32, i32
  }
  func.func @transform_4(%arg0: i32, %arg1: i32) -> (i32, i32) {
    %c0_i32 = arith.constant 0 : i32
    %c0_i32_0 = arith.constant 0 : i32
    return %arg0, %c0_i32 : i32, i32
  }
  func.func @transform_5(%arg0: i32, %arg1: i32) -> (i32, i32) {
    %c0_i32 = arith.constant 0 : i32
    %c0_i32_0 = arith.constant 0 : i32
    return %arg0, %c0_i32 : i32, i32
  }
  func.func @transform_6(%arg0: i32, %arg1: i32) -> (i32, i32) {
    %c0_i32 = arith.constant 0 : i32
    %c0_i32_0 = arith.constant 0 : i32
    return %arg0, %c0_i32 : i32, i32
  }
}

module attributes {stable_mosaic.version = 11 : i64} {
  func.func @_affine_lrelu_kernel(%arg0: i32, %arg1: memref<32x128xbf16, #tpu.memory_space<vmem>>, %arg2: memref<1x128xf32, #tpu.memory_space<vmem>>, %arg3: memref<1x128xf32, #tpu.memory_space<vmem>>, %arg4: memref<32x128xbf16, #tpu.memory_space<vmem>>) attributes {dimension_semantics = [#tpu.dimension_semantics<parallel>], iteration_bounds = array<i64: 1>, scalar_prefetch = 0 : i64, scratch_operands = 0 : i64, tpu.core_type = #tpu.core_type<tc>, window_params = [{transform_indices = @transform_0, window_bounds = array<i64: 32, 128>}, {pipeline_mode = #tpu.pipeline_mode<synchronous>, transform_indices = @transform_1, window_bounds = array<i64: 1, 128>}, {pipeline_mode = #tpu.pipeline_mode<synchronous>, transform_indices = @transform_2, window_bounds = array<i64: 1, 128>}, {transform_indices = @transform_3, window_bounds = array<i64: 32, 128>}]} {
    %c0 = arith.constant 0 : index
    %c0_0 = arith.constant 0 : index
    %0 = vector.load %arg1[%c0, %c0_0] : memref<32x128xbf16, #tpu.memory_space<vmem>>, vector<32x128xbf16>
    %1 = arith.extf %0 : vector<32x128xbf16> to vector<32x128xf32>
    %c0_1 = arith.constant 0 : index
    %c0_2 = arith.constant 0 : index
    %2 = vector.load %arg2[%c0_1, %c0_2] : memref<1x128xf32, #tpu.memory_space<vmem>>, vector<1x128xf32>
    %3 = vector.broadcast %2 : vector<1x128xf32> to vector<32x128xf32>
    %4 = arith.mulf %1, %3 : vector<32x128xf32>
    %c0_3 = arith.constant 0 : index
    %c0_4 = arith.constant 0 : index
    %5 = vector.load %arg3[%c0_3, %c0_4] : memref<1x128xf32, #tpu.memory_space<vmem>>, vector<1x128xf32>
    %6 = vector.broadcast %5 : vector<1x128xf32> to vector<32x128xf32>
    %7 = arith.addf %4, %6 : vector<32x128xf32>
    %cst = arith.constant 2.000000e-01 : f32
    %8 = vector.broadcast %cst : f32 to vector<32x128xf32>
    %9 = arith.mulf %8, %7 : vector<32x128xf32>
    %10 = arith.maximumf %7, %9 : vector<32x128xf32>
    %11 = arith.truncf %10 : vector<32x128xf32> to vector<32x128xbf16>
    %c0_5 = arith.constant 0 : index
    %c0_6 = arith.constant 0 : index
    %12 = vector.load %arg4[%c0_5, %c0_6] : memref<32x128xbf16, #tpu.memory_space<vmem>>, vector<32x128xbf16>
    tpu.vector_store %arg4[%c0_5, %c0_6], %11 {strides = array<i32>} : memref<32x128xbf16, #tpu.memory_space<vmem>>, vector<32x128xbf16>,
    return
  }
  func.func @transform_0(%arg0: i32) -> (i32, i32) {
    %c0_i32 = arith.constant 0 : i32
    %c0_i32_0 = arith.constant 0 : i32
    return %arg0, %c0_i32 : i32, i32
  }
  func.func @transform_1(%arg0: i32) -> (i32, i32) {
    %c0_i32 = arith.constant 0 : i32
    %c0_i32_0 = arith.constant 0 : i32
    %c0_i32_1 = arith.constant 0 : i32
    return %c0_i32, %c0_i32_0 : i32, i32
  }
  func.func @transform_2(%arg0: i32) -> (i32, i32) {
    %c0_i32 = arith.constant 0 : i32
    %c0_i32_0 = arith.constant 0 : i32
    %c0_i32_1 = arith.constant 0 : i32
    return %c0_i32, %c0_i32_0 : i32, i32
  }
  func.func @transform_3(%arg0: i32) -> (i32, i32) {
    %c0_i32 = arith.constant 0 : i32
    %c0_i32_0 = arith.constant 0 : i32
    return %arg0, %c0_i32 : i32, i32
  }
}

module attributes {stable_mosaic.version = 11 : i64} {
  func.func @_conv_matmul_kernel(%arg0: i32, %arg1: i32, %arg2: memref<32x512xbf16, #tpu.memory_space<vmem>>, %arg3: memref<512x128xbf16, #tpu.memory_space<vmem>>, %arg4: memref<1x128xf32, #tpu.memory_space<vmem>>, %arg5: memref<1x128xf32, #tpu.memory_space<vmem>>, %arg6: memref<32x128xbf16, #tpu.memory_space<vmem>>, %arg7: memref<8x128xf32, #tpu.memory_space<vmem>>, %arg8: memref<8x128xf32, #tpu.memory_space<vmem>>, %arg9: memref<32x128xf32, #tpu.memory_space<vmem>>) attributes {dimension_semantics = [#tpu.dimension_semantics<parallel>, #tpu.dimension_semantics<arbitrary>], iteration_bounds = array<i64: 1, 1>, scalar_prefetch = 0 : i64, scratch_operands = 1 : i64, tpu.core_type = #tpu.core_type<tc>, window_params = [{transform_indices = @transform_0, window_bounds = array<i64: 32, 512>}, {transform_indices = @transform_1, window_bounds = array<i64: 512, 128>}, {pipeline_mode = #tpu.pipeline_mode<synchronous>, transform_indices = @transform_2, window_bounds = array<i64: 1, 128>}, {pipeline_mode = #tpu.pipeline_mode<synchronous>, transform_indices = @transform_3, window_bounds = array<i64: 1, 128>}, {transform_indices = @transform_4, window_bounds = array<i64: 32, 128>}, {transform_indices = @transform_5, window_bounds = array<i64: 8, 128>}, {transform_indices = @transform_6, window_bounds = array<i64: 8, 128>}]} {
    %c0_i32 = arith.constant 0 : i32
    %0 = arith.cmpi eq, %arg1, %c0_i32 : i32
    %1 = arith.extui %0 : i1 to i32
    %c0_i32_0 = arith.constant 0 : i32
    %2 = arith.cmpi ne, %1, %c0_i32_0 : i32
    scf.if %2 {
      %cst_10 = arith.constant 0.000000e+00 : f32
      %12 = vector.broadcast %cst_10 : f32 to vector<32x128xf32>
      %c0_11 = arith.constant 0 : index
      %c0_12 = arith.constant 0 : index
      %13 = vector.load %arg9[%c0_11, %c0_12] : memref<32x128xf32, #tpu.memory_space<vmem>>, vector<32x128xf32>
      tpu.vector_store %arg9[%c0_11, %c0_12], %12 {strides = array<i32>} : memref<32x128xf32, #tpu.memory_space<vmem>>, vector<32x128xf32>,
    } else {
    }
    %c0 = arith.constant 0 : index
    %c0_1 = arith.constant 0 : index
    %3 = vector.load %arg9[%c0, %c0_1] : memref<32x128xf32, #tpu.memory_space<vmem>>, vector<32x128xf32>
    %c0_2 = arith.constant 0 : index
    %c0_3 = arith.constant 0 : index
    %4 = vector.load %arg2[%c0_2, %c0_3] : memref<32x512xbf16, #tpu.memory_space<vmem>>, vector<32x512xbf16>
    %c0_4 = arith.constant 0 : index
    %c0_5 = arith.constant 0 : index
    %5 = vector.load %arg3[%c0_4, %c0_5] : memref<512x128xbf16, #tpu.memory_space<vmem>>, vector<512x128xbf16>
    %cst = arith.constant dense<0.000000e+00> : vector<32x128xf32>
    %6 = tpu.matmul %4, %5, %cst {dimension_numbers = #tpu.dot_dimension_numbers<[1], [0], [0], [1], [0, 0, 1, 1], [], []>} : vector<32x512xbf16>, vector<512x128xbf16>, vector<32x128xf32> -> vector<32x128xf32>
    %7 = arith.addf %3, %6 : vector<32x128xf32>
    %c0_6 = arith.constant 0 : index
    %c0_7 = arith.constant 0 : index
    %8 = vector.load %arg9[%c0_6, %c0_7] : memref<32x128xf32, #tpu.memory_space<vmem>>, vector<32x128xf32>
    tpu.vector_store %arg9[%c0_6, %c0_7], %7 {strides = array<i32>} : memref<32x128xf32, #tpu.memory_space<vmem>>, vector<32x128xf32>,
    %c0_i32_8 = arith.constant 0 : i32
    %9 = arith.cmpi eq, %arg1, %c0_i32_8 : i32
    %10 = arith.extui %9 : i1 to i32
    %c0_i32_9 = arith.constant 0 : i32
    %11 = arith.cmpi ne, %10, %c0_i32_9 : i32
    scf.if %11 {
      %c0_10 = arith.constant 0 : index
      %c0_11 = arith.constant 0 : index
      %12 = vector.load %arg9[%c0_10, %c0_11] : memref<32x128xf32, #tpu.memory_space<vmem>>, vector<32x128xf32>
      %c0_12 = arith.constant 0 : index
      %c0_13 = arith.constant 0 : index
      %13 = vector.load %arg4[%c0_12, %c0_13] : memref<1x128xf32, #tpu.memory_space<vmem>>, vector<1x128xf32>
      %14 = vector.broadcast %13 : vector<1x128xf32> to vector<32x128xf32>
      %15 = arith.mulf %12, %14 : vector<32x128xf32>
      %c0_14 = arith.constant 0 : index
      %c0_15 = arith.constant 0 : index
      %16 = vector.load %arg5[%c0_14, %c0_15] : memref<1x128xf32, #tpu.memory_space<vmem>>, vector<1x128xf32>
      %17 = vector.broadcast %16 : vector<1x128xf32> to vector<32x128xf32>
      %18 = arith.addf %15, %17 : vector<32x128xf32>
      %19 = vector.shape_cast %18 : vector<32x128xf32> to vector<4x8x128xf32>
      %cst_16 = arith.constant dense<0.000000e+00> : vector<8x128xf32>
      %20 = vector.multi_reduction <add>, %19, %cst_16 [0] : vector<4x8x128xf32> to vector<8x128xf32>
      %c0_17 = arith.constant 0 : index
      %c0_18 = arith.constant 0 : index
      %21 = vector.load %arg7[%c0_17, %c0_18] : memref<8x128xf32, #tpu.memory_space<vmem>>, vector<8x128xf32>
      tpu.vector_store %arg7[%c0_17, %c0_18], %20 {strides = array<i32>} : memref<8x128xf32, #tpu.memory_space<vmem>>, vector<8x128xf32>,
      %22 = arith.mulf %19, %19 : vector<4x8x128xf32>
      %cst_19 = arith.constant dense<0.000000e+00> : vector<8x128xf32>
      %23 = vector.multi_reduction <add>, %22, %cst_19 [0] : vector<4x8x128xf32> to vector<8x128xf32>
      %c0_20 = arith.constant 0 : index
      %c0_21 = arith.constant 0 : index
      %24 = vector.load %arg8[%c0_20, %c0_21] : memref<8x128xf32, #tpu.memory_space<vmem>>, vector<8x128xf32>
      tpu.vector_store %arg8[%c0_20, %c0_21], %23 {strides = array<i32>} : memref<8x128xf32, #tpu.memory_space<vmem>>, vector<8x128xf32>,
      %25 = arith.truncf %18 : vector<32x128xf32> to vector<32x128xbf16>
      %c0_22 = arith.constant 0 : index
      %c0_23 = arith.constant 0 : index
      %26 = vector.load %arg6[%c0_22, %c0_23] : memref<32x128xbf16, #tpu.memory_space<vmem>>, vector<32x128xbf16>
      tpu.vector_store %arg6[%c0_22, %c0_23], %25 {strides = array<i32>} : memref<32x128xbf16, #tpu.memory_space<vmem>>, vector<32x128xbf16>,
    } else {
    }
    return
  }
  func.func @transform_0(%arg0: i32, %arg1: i32) -> (i32, i32) {
    %c0_i32 = arith.constant 0 : i32
    return %arg0, %arg1 : i32, i32
  }
  func.func @transform_1(%arg0: i32, %arg1: i32) -> (i32, i32) {
    %c0_i32 = arith.constant 0 : i32
    %c0_i32_0 = arith.constant 0 : i32
    return %arg1, %c0_i32 : i32, i32
  }
  func.func @transform_2(%arg0: i32, %arg1: i32) -> (i32, i32) {
    %c0_i32 = arith.constant 0 : i32
    %c0_i32_0 = arith.constant 0 : i32
    %c0_i32_1 = arith.constant 0 : i32
    return %c0_i32, %c0_i32_0 : i32, i32
  }
  func.func @transform_3(%arg0: i32, %arg1: i32) -> (i32, i32) {
    %c0_i32 = arith.constant 0 : i32
    %c0_i32_0 = arith.constant 0 : i32
    %c0_i32_1 = arith.constant 0 : i32
    return %c0_i32, %c0_i32_0 : i32, i32
  }
  func.func @transform_4(%arg0: i32, %arg1: i32) -> (i32, i32) {
    %c0_i32 = arith.constant 0 : i32
    %c0_i32_0 = arith.constant 0 : i32
    return %arg0, %c0_i32 : i32, i32
  }
  func.func @transform_5(%arg0: i32, %arg1: i32) -> (i32, i32) {
    %c0_i32 = arith.constant 0 : i32
    %c0_i32_0 = arith.constant 0 : i32
    return %arg0, %c0_i32 : i32, i32
  }
  func.func @transform_6(%arg0: i32, %arg1: i32) -> (i32, i32) {
    %c0_i32 = arith.constant 0 : i32
    %c0_i32_0 = arith.constant 0 : i32
    return %arg0, %c0_i32 : i32, i32
  }
}

module attributes {stable_mosaic.version = 11 : i64} {
  func.func @_affine_lrelu_kernel(%arg0: i32, %arg1: memref<24x128xbf16, #tpu.memory_space<vmem>>, %arg2: memref<1x128xf32, #tpu.memory_space<vmem>>, %arg3: memref<1x128xf32, #tpu.memory_space<vmem>>, %arg4: memref<24x128xbf16, #tpu.memory_space<vmem>>) attributes {dimension_semantics = [#tpu.dimension_semantics<parallel>], iteration_bounds = array<i64: 1>, scalar_prefetch = 0 : i64, scratch_operands = 0 : i64, tpu.core_type = #tpu.core_type<tc>, window_params = [{transform_indices = @transform_0, window_bounds = array<i64: 24, 128>}, {pipeline_mode = #tpu.pipeline_mode<synchronous>, transform_indices = @transform_1, window_bounds = array<i64: 1, 128>}, {pipeline_mode = #tpu.pipeline_mode<synchronous>, transform_indices = @transform_2, window_bounds = array<i64: 1, 128>}, {transform_indices = @transform_3, window_bounds = array<i64: 24, 128>}]} {
    %c0 = arith.constant 0 : index
    %c0_0 = arith.constant 0 : index
    %0 = vector.load %arg1[%c0, %c0_0] : memref<24x128xbf16, #tpu.memory_space<vmem>>, vector<24x128xbf16>
    %1 = arith.extf %0 : vector<24x128xbf16> to vector<24x128xf32>
    %c0_1 = arith.constant 0 : index
    %c0_2 = arith.constant 0 : index
    %2 = vector.load %arg2[%c0_1, %c0_2] : memref<1x128xf32, #tpu.memory_space<vmem>>, vector<1x128xf32>
    %3 = vector.broadcast %2 : vector<1x128xf32> to vector<24x128xf32>
    %4 = arith.mulf %1, %3 : vector<24x128xf32>
    %c0_3 = arith.constant 0 : index
    %c0_4 = arith.constant 0 : index
    %5 = vector.load %arg3[%c0_3, %c0_4] : memref<1x128xf32, #tpu.memory_space<vmem>>, vector<1x128xf32>
    %6 = vector.broadcast %5 : vector<1x128xf32> to vector<24x128xf32>
    %7 = arith.addf %4, %6 : vector<24x128xf32>
    %cst = arith.constant 2.000000e-01 : f32
    %8 = vector.broadcast %cst : f32 to vector<24x128xf32>
    %9 = arith.mulf %8, %7 : vector<24x128xf32>
    %10 = arith.maximumf %7, %9 : vector<24x128xf32>
    %11 = arith.truncf %10 : vector<24x128xf32> to vector<24x128xbf16>
    %c0_5 = arith.constant 0 : index
    %c0_6 = arith.constant 0 : index
    %12 = vector.load %arg4[%c0_5, %c0_6] : memref<24x128xbf16, #tpu.memory_space<vmem>>, vector<24x128xbf16>
    tpu.vector_store %arg4[%c0_5, %c0_6], %11 {strides = array<i32>} : memref<24x128xbf16, #tpu.memory_space<vmem>>, vector<24x128xbf16>,
    return
  }
  func.func @transform_0(%arg0: i32) -> (i32, i32) {
    %c0_i32 = arith.constant 0 : i32
    %c0_i32_0 = arith.constant 0 : i32
    return %arg0, %c0_i32 : i32, i32
  }
  func.func @transform_1(%arg0: i32) -> (i32, i32) {
    %c0_i32 = arith.constant 0 : i32
    %c0_i32_0 = arith.constant 0 : i32
    %c0_i32_1 = arith.constant 0 : i32
    return %c0_i32, %c0_i32_0 : i32, i32
  }
  func.func @transform_2(%arg0: i32) -> (i32, i32) {
    %c0_i32 = arith.constant 0 : i32
    %c0_i32_0 = arith.constant 0 : i32
    %c0_i32_1 = arith.constant 0 : i32
    return %c0_i32, %c0_i32_0 : i32, i32
  }
  func.func @transform_3(%arg0: i32) -> (i32, i32) {
    %c0_i32 = arith.constant 0 : i32
    %c0_i32_0 = arith.constant 0 : i32
    return %arg0, %c0_i32 : i32, i32
  }
}

module attributes {stable_mosaic.version = 11 : i64} {
  func.func @_conv_matmul_kernel(%arg0: i32, %arg1: i32, %arg2: memref<24x512xbf16, #tpu.memory_space<vmem>>, %arg3: memref<512x128xbf16, #tpu.memory_space<vmem>>, %arg4: memref<1x128xf32, #tpu.memory_space<vmem>>, %arg5: memref<1x128xf32, #tpu.memory_space<vmem>>, %arg6: memref<24x128xbf16, #tpu.memory_space<vmem>>, %arg7: memref<8x128xf32, #tpu.memory_space<vmem>>, %arg8: memref<8x128xf32, #tpu.memory_space<vmem>>, %arg9: memref<24x128xf32, #tpu.memory_space<vmem>>) attributes {dimension_semantics = [#tpu.dimension_semantics<parallel>, #tpu.dimension_semantics<arbitrary>], iteration_bounds = array<i64: 1, 2>, scalar_prefetch = 0 : i64, scratch_operands = 1 : i64, tpu.core_type = #tpu.core_type<tc>, window_params = [{transform_indices = @transform_0, window_bounds = array<i64: 24, 512>}, {transform_indices = @transform_1, window_bounds = array<i64: 512, 128>}, {pipeline_mode = #tpu.pipeline_mode<synchronous>, transform_indices = @transform_2, window_bounds = array<i64: 1, 128>}, {pipeline_mode = #tpu.pipeline_mode<synchronous>, transform_indices = @transform_3, window_bounds = array<i64: 1, 128>}, {transform_indices = @transform_4, window_bounds = array<i64: 24, 128>}, {transform_indices = @transform_5, window_bounds = array<i64: 8, 128>}, {transform_indices = @transform_6, window_bounds = array<i64: 8, 128>}]} {
    %c0_i32 = arith.constant 0 : i32
    %0 = arith.cmpi eq, %arg1, %c0_i32 : i32
    %1 = arith.extui %0 : i1 to i32
    %c0_i32_0 = arith.constant 0 : i32
    %2 = arith.cmpi ne, %1, %c0_i32_0 : i32
    scf.if %2 {
      %cst_9 = arith.constant 0.000000e+00 : f32
      %12 = vector.broadcast %cst_9 : f32 to vector<24x128xf32>
      %c0_10 = arith.constant 0 : index
      %c0_11 = arith.constant 0 : index
      %13 = vector.load %arg9[%c0_10, %c0_11] : memref<24x128xf32, #tpu.memory_space<vmem>>, vector<24x128xf32>
      tpu.vector_store %arg9[%c0_10, %c0_11], %12 {strides = array<i32>} : memref<24x128xf32, #tpu.memory_space<vmem>>, vector<24x128xf32>,
    } else {
    }
    %c0 = arith.constant 0 : index
    %c0_1 = arith.constant 0 : index
    %3 = vector.load %arg9[%c0, %c0_1] : memref<24x128xf32, #tpu.memory_space<vmem>>, vector<24x128xf32>
    %c0_2 = arith.constant 0 : index
    %c0_3 = arith.constant 0 : index
    %4 = vector.load %arg2[%c0_2, %c0_3] : memref<24x512xbf16, #tpu.memory_space<vmem>>, vector<24x512xbf16>
    %c0_4 = arith.constant 0 : index
    %c0_5 = arith.constant 0 : index
    %5 = vector.load %arg3[%c0_4, %c0_5] : memref<512x128xbf16, #tpu.memory_space<vmem>>, vector<512x128xbf16>
    %cst = arith.constant dense<0.000000e+00> : vector<24x128xf32>
    %6 = tpu.matmul %4, %5, %cst {dimension_numbers = #tpu.dot_dimension_numbers<[1], [0], [0], [1], [0, 0, 1, 1], [], []>} : vector<24x512xbf16>, vector<512x128xbf16>, vector<24x128xf32> -> vector<24x128xf32>
    %7 = arith.addf %3, %6 : vector<24x128xf32>
    %c0_6 = arith.constant 0 : index
    %c0_7 = arith.constant 0 : index
    %8 = vector.load %arg9[%c0_6, %c0_7] : memref<24x128xf32, #tpu.memory_space<vmem>>, vector<24x128xf32>
    tpu.vector_store %arg9[%c0_6, %c0_7], %7 {strides = array<i32>} : memref<24x128xf32, #tpu.memory_space<vmem>>, vector<24x128xf32>,
    %c1_i32 = arith.constant 1 : i32
    %9 = arith.cmpi eq, %arg1, %c1_i32 : i32
    %10 = arith.extui %9 : i1 to i32
    %c0_i32_8 = arith.constant 0 : i32
    %11 = arith.cmpi ne, %10, %c0_i32_8 : i32
    scf.if %11 {
      %c0_9 = arith.constant 0 : index
      %c0_10 = arith.constant 0 : index
      %12 = vector.load %arg9[%c0_9, %c0_10] : memref<24x128xf32, #tpu.memory_space<vmem>>, vector<24x128xf32>
      %c0_11 = arith.constant 0 : index
      %c0_12 = arith.constant 0 : index
      %13 = vector.load %arg4[%c0_11, %c0_12] : memref<1x128xf32, #tpu.memory_space<vmem>>, vector<1x128xf32>
      %14 = vector.broadcast %13 : vector<1x128xf32> to vector<24x128xf32>
      %15 = arith.mulf %12, %14 : vector<24x128xf32>
      %c0_13 = arith.constant 0 : index
      %c0_14 = arith.constant 0 : index
      %16 = vector.load %arg5[%c0_13, %c0_14] : memref<1x128xf32, #tpu.memory_space<vmem>>, vector<1x128xf32>
      %17 = vector.broadcast %16 : vector<1x128xf32> to vector<24x128xf32>
      %18 = arith.addf %15, %17 : vector<24x128xf32>
      %19 = vector.shape_cast %18 : vector<24x128xf32> to vector<3x8x128xf32>
      %cst_15 = arith.constant dense<0.000000e+00> : vector<8x128xf32>
      %20 = vector.multi_reduction <add>, %19, %cst_15 [0] : vector<3x8x128xf32> to vector<8x128xf32>
      %c0_16 = arith.constant 0 : index
      %c0_17 = arith.constant 0 : index
      %21 = vector.load %arg7[%c0_16, %c0_17] : memref<8x128xf32, #tpu.memory_space<vmem>>, vector<8x128xf32>
      tpu.vector_store %arg7[%c0_16, %c0_17], %20 {strides = array<i32>} : memref<8x128xf32, #tpu.memory_space<vmem>>, vector<8x128xf32>,
      %22 = arith.mulf %19, %19 : vector<3x8x128xf32>
      %cst_18 = arith.constant dense<0.000000e+00> : vector<8x128xf32>
      %23 = vector.multi_reduction <add>, %22, %cst_18 [0] : vector<3x8x128xf32> to vector<8x128xf32>
      %c0_19 = arith.constant 0 : index
      %c0_20 = arith.constant 0 : index
      %24 = vector.load %arg8[%c0_19, %c0_20] : memref<8x128xf32, #tpu.memory_space<vmem>>, vector<8x128xf32>
      tpu.vector_store %arg8[%c0_19, %c0_20], %23 {strides = array<i32>} : memref<8x128xf32, #tpu.memory_space<vmem>>, vector<8x128xf32>,
      %25 = arith.truncf %18 : vector<24x128xf32> to vector<24x128xbf16>
      %c0_21 = arith.constant 0 : index
      %c0_22 = arith.constant 0 : index
      %26 = vector.load %arg6[%c0_21, %c0_22] : memref<24x128xbf16, #tpu.memory_space<vmem>>, vector<24x128xbf16>
      tpu.vector_store %arg6[%c0_21, %c0_22], %25 {strides = array<i32>} : memref<24x128xbf16, #tpu.memory_space<vmem>>, vector<24x128xbf16>,
    } else {
    }
    return
  }
  func.func @transform_0(%arg0: i32, %arg1: i32) -> (i32, i32) {
    %c0_i32 = arith.constant 0 : i32
    return %arg0, %arg1 : i32, i32
  }
  func.func @transform_1(%arg0: i32, %arg1: i32) -> (i32, i32) {
    %c0_i32 = arith.constant 0 : i32
    %c0_i32_0 = arith.constant 0 : i32
    return %arg1, %c0_i32 : i32, i32
  }
  func.func @transform_2(%arg0: i32, %arg1: i32) -> (i32, i32) {
    %c0_i32 = arith.constant 0 : i32
    %c0_i32_0 = arith.constant 0 : i32
    %c0_i32_1 = arith.constant 0 : i32
    return %c0_i32, %c0_i32_0 : i32, i32
  }
  func.func @transform_3(%arg0: i32, %arg1: i32) -> (i32, i32) {
    %c0_i32 = arith.constant 0 : i32
    %c0_i32_0 = arith.constant 0 : i32
    %c0_i32_1 = arith.constant 0 : i32
    return %c0_i32, %c0_i32_0 : i32, i32
  }
  func.func @transform_4(%arg0: i32, %arg1: i32) -> (i32, i32) {
    %c0_i32 = arith.constant 0 : i32
    %c0_i32_0 = arith.constant 0 : i32
    return %arg0, %c0_i32 : i32, i32
  }
  func.func @transform_5(%arg0: i32, %arg1: i32) -> (i32, i32) {
    %c0_i32 = arith.constant 0 : i32
    %c0_i32_0 = arith.constant 0 : i32
    return %arg0, %c0_i32 : i32, i32
  }
  func.func @transform_6(%arg0: i32, %arg1: i32) -> (i32, i32) {
    %c0_i32 = arith.constant 0 : i32
    %c0_i32_0 = arith.constant 0 : i32
    return %arg0, %c0_i32 : i32, i32
  }
}

module attributes {stable_mosaic.version = 11 : i64} {
  func.func @_conv_matmul_kernel(%arg0: i32, %arg1: i32, %arg2: memref<8x512xbf16, #tpu.memory_space<vmem>>, %arg3: memref<512x128xbf16, #tpu.memory_space<vmem>>, %arg4: memref<1x128xf32, #tpu.memory_space<vmem>>, %arg5: memref<1x128xf32, #tpu.memory_space<vmem>>, %arg6: memref<8x128xf32, #tpu.memory_space<vmem>>, %arg7: memref<8x128xf32, #tpu.memory_space<vmem>>) attributes {dimension_semantics = [#tpu.dimension_semantics<parallel>, #tpu.dimension_semantics<arbitrary>], iteration_bounds = array<i64: 1, 4>, scalar_prefetch = 0 : i64, scratch_operands = 1 : i64, tpu.core_type = #tpu.core_type<tc>, window_params = [{transform_indices = @transform_0, window_bounds = array<i64: 8, 512>}, {transform_indices = @transform_1, window_bounds = array<i64: 512, 128>}, {pipeline_mode = #tpu.pipeline_mode<synchronous>, transform_indices = @transform_2, window_bounds = array<i64: 1, 128>}, {pipeline_mode = #tpu.pipeline_mode<synchronous>, transform_indices = @transform_3, window_bounds = array<i64: 1, 128>}, {transform_indices = @transform_4, window_bounds = array<i64: 8, 128>}]} {
    %c0_i32 = arith.constant 0 : i32
    %0 = arith.cmpi eq, %arg1, %c0_i32 : i32
    %1 = arith.extui %0 : i1 to i32
    %c0_i32_0 = arith.constant 0 : i32
    %2 = arith.cmpi ne, %1, %c0_i32_0 : i32
    scf.if %2 {
      %cst_9 = arith.constant 0.000000e+00 : f32
      %12 = vector.broadcast %cst_9 : f32 to vector<8x128xf32>
      %c0_10 = arith.constant 0 : index
      %c0_11 = arith.constant 0 : index
      %13 = vector.load %arg7[%c0_10, %c0_11] : memref<8x128xf32, #tpu.memory_space<vmem>>, vector<8x128xf32>
      tpu.vector_store %arg7[%c0_10, %c0_11], %12 {strides = array<i32>} : memref<8x128xf32, #tpu.memory_space<vmem>>, vector<8x128xf32>,
    } else {
    }
    %c0 = arith.constant 0 : index
    %c0_1 = arith.constant 0 : index
    %3 = vector.load %arg7[%c0, %c0_1] : memref<8x128xf32, #tpu.memory_space<vmem>>, vector<8x128xf32>
    %c0_2 = arith.constant 0 : index
    %c0_3 = arith.constant 0 : index
    %4 = vector.load %arg2[%c0_2, %c0_3] : memref<8x512xbf16, #tpu.memory_space<vmem>>, vector<8x512xbf16>
    %c0_4 = arith.constant 0 : index
    %c0_5 = arith.constant 0 : index
    %5 = vector.load %arg3[%c0_4, %c0_5] : memref<512x128xbf16, #tpu.memory_space<vmem>>, vector<512x128xbf16>
    %cst = arith.constant dense<0.000000e+00> : vector<8x128xf32>
    %6 = tpu.matmul %4, %5, %cst {dimension_numbers = #tpu.dot_dimension_numbers<[1], [0], [0], [1], [0, 0, 1, 1], [], []>} : vector<8x512xbf16>, vector<512x128xbf16>, vector<8x128xf32> -> vector<8x128xf32>
    %7 = arith.addf %3, %6 : vector<8x128xf32>
    %c0_6 = arith.constant 0 : index
    %c0_7 = arith.constant 0 : index
    %8 = vector.load %arg7[%c0_6, %c0_7] : memref<8x128xf32, #tpu.memory_space<vmem>>, vector<8x128xf32>
    tpu.vector_store %arg7[%c0_6, %c0_7], %7 {strides = array<i32>} : memref<8x128xf32, #tpu.memory_space<vmem>>, vector<8x128xf32>,
    %c3_i32 = arith.constant 3 : i32
    %9 = arith.cmpi eq, %arg1, %c3_i32 : i32
    %10 = arith.extui %9 : i1 to i32
    %c0_i32_8 = arith.constant 0 : i32
    %11 = arith.cmpi ne, %10, %c0_i32_8 : i32
    scf.if %11 {
      %c0_9 = arith.constant 0 : index
      %c0_10 = arith.constant 0 : index
      %12 = vector.load %arg7[%c0_9, %c0_10] : memref<8x128xf32, #tpu.memory_space<vmem>>, vector<8x128xf32>
      %c0_11 = arith.constant 0 : index
      %c0_12 = arith.constant 0 : index
      %13 = vector.load %arg4[%c0_11, %c0_12] : memref<1x128xf32, #tpu.memory_space<vmem>>, vector<1x128xf32>
      %14 = vector.broadcast %13 : vector<1x128xf32> to vector<8x128xf32>
      %15 = arith.mulf %12, %14 : vector<8x128xf32>
      %c0_13 = arith.constant 0 : index
      %c0_14 = arith.constant 0 : index
      %16 = vector.load %arg5[%c0_13, %c0_14] : memref<1x128xf32, #tpu.memory_space<vmem>>, vector<1x128xf32>
      %17 = vector.broadcast %16 : vector<1x128xf32> to vector<8x128xf32>
      %18 = arith.addf %15, %17 : vector<8x128xf32>
      %c0_15 = arith.constant 0 : index
      %c0_16 = arith.constant 0 : index
      %19 = vector.load %arg6[%c0_15, %c0_16] : memref<8x128xf32, #tpu.memory_space<vmem>>, vector<8x128xf32>
      tpu.vector_store %arg6[%c0_15, %c0_16], %18 {strides = array<i32>} : memref<8x128xf32, #tpu.memory_space<vmem>>, vector<8x128xf32>,
    } else {
    }
    return
  }
  func.func @transform_0(%arg0: i32, %arg1: i32) -> (i32, i32) {
    %c0_i32 = arith.constant 0 : i32
    return %arg0, %arg1 : i32, i32
  }
  func.func @transform_1(%arg0: i32, %arg1: i32) -> (i32, i32) {
    %c0_i32 = arith.constant 0 : i32
    %c0_i32_0 = arith.constant 0 : i32
    return %arg1, %c0_i32 : i32, i32
  }
  func.func @transform_2(%arg0: i32, %arg1: i32) -> (i32, i32) {
    %c0_i32 = arith.constant 0 : i32
    %c0_i32_0 = arith.constant 0 : i32
    %c0_i32_1 = arith.constant 0 : i32
    return %c0_i32, %c0_i32_0 : i32, i32
  }
  func.func @transform_3(%arg0: i32, %arg1: i32) -> (i32, i32) {
    %c0_i32 = arith.constant 0 : i32
    %c0_i32_0 = arith.constant 0 : i32
    %c0_i32_1 = arith.constant 0 : i32
    return %c0_i32, %c0_i32_0 : i32, i32
  }
  func.func @transform_4(%arg0: i32, %arg1: i32) -> (i32, i32) {
    %c0_i32 = arith.constant 0 : i32
    %c0_i32_0 = arith.constant 0 : i32
    return %arg0, %c0_i32 : i32, i32
  }
}

</mosaic_0001>

<bundles_post_ra>
// kernel: _lambda_.8
= control target key start
LH: loop header
LB: loop body
LE: loop exit
PB: predicated region body
PF: predicated region fallthrough
CT: control target
= control target key end

     0   :  { %s1534_s15 = smov 0   ;;  %s1536_s16 = smov 0   ;;  %s1708_s0 = inlined_call_operand.vmem [shape: bf16[512,128], index: 0, kind: input, shape index: {}]   ;;  %s1709_s1 = inlined_call_operand.vmem [shape: bf16[128,128], index: 1, kind: input, shape index: {}]   ;;  %s1710_s2 = inlined_call_operand.vmem [shape: f32[1,128], index: 2, kind: input, shape index: {}]   ;;  %s1711_s3 = inlined_call_operand.vmem [shape: f32[1,128], index: 3, kind: input, shape index: {}]   ;;  %s1712_s4 = inlined_call_operand.vmem [shape: bf16[512,128], index: 4, kind: output, shape index: {}]  }
   0x1   :  { %s1538_s17 = smov 0  }
   0x2 LB: > { %s26_s18 = sadd.s32 1, %s1503_s16  ;;  %p1157_p0 = scmp.ge.s32.totalorder %s1507_s17, 1  ;;  %s1507_s17 = sphi %s1538_s17, %s14_s17   ;;  %s1503_s16 = sphi %s1536_s16, %s1714_s16   ;;  %s1499_s15 = sphi %s1534_s15, %s1713_s15  }
   0x3   : > { %p28_p1 = scmp.ge.s32.totalorder %s26_s18, 2  ;;  %p191_p2 = scmp.lt.s32.totalorder %s1507_s17, 3 }
   0x5   : > { %s1716_s18 = smov (%p28_p1, %s26_s18), 0  ;;  %p192_p3 = pnand %p1157_p0, %p191_p2 }
   0x6   : > { %v1461_v0 = vld [vmem:[%s1709_s1] sm:$0xff] (!%p192_p3)   ;;  %s1158_s21 = sshll.u32 (!%p192_p3), %s1499_s15, 5  ;;  %v1462_v1 = vld [vmem:[%s1709_s1 + $0x8] sm:$0xff] (!%p192_p3)   ;;  %v1463_v2 = vld [vmem:[%s1709_s1 + $0x10] sm:$0xff] (!%p192_p3)  }
   0x7   : > { %195 = sbr.rel (%p192_p3) target bundleno = 293 (0x125), region = 36  ;;  %p226_p4 = scmp.lt.s32.totalorder (!%p192_p3), %s1158_s21, 63  ;;  %1373 = vmatprep.subr.bf16.mxu0 (!%p192_p3), %v1461_v0  ;;  %1421 = vmatprep.subr.bf16.mxu1 (!%p192_p3), %v1461_v0  ;;  %v1464_v3 = vld [vmem:[%s1709_s1 + $0x18] sm:$0xff] (!%p192_p3)   ;;  %v1465_v6 = vld [vmem:[%s1709_s1 + $0x20] sm:$0xff] (!%p192_p3)   ;;  %v1466_v7 = vld [vmem:[%s1709_s1 + $0x28] sm:$0xff] (!%p192_p3)  }
   0x8   : > { %1374 = vmatpush3.bf16.msra.mxu0 (!%p192_p3), %v1461_v0  ;;  %1429 = vmatpush3.bf16.msra.mxu1 (!%p192_p3), %v1461_v0  ;;  %v1467_v8 = vld [vmem:[%s1709_s1 + $0x30] sm:$0xff] (!%p192_p3)   ;;  %v1468_v9 = vld [vmem:[%s1709_s1 + $0x38] sm:$0xff] (!%p192_p3)   ;;  %v1605_v24 = vld [vmem:[%s1710_s2] ss:$0 sm:$0xff] (!%p192_p3) }
   0x9   : > { %1375 = vmatprep.subr.bf16.mxu0 (!%p192_p3), %v1462_v1  ;;  %1422 = vmatprep.subr.bf16.mxu1 (!%p192_p3), %v1462_v1  ;;  %v1610_v26 = vld [vmem:[%s1711_s3] ss:$0 sm:$0xff] (!%p192_p3) }
   0xc   : > { %1376 = vmatpush3.bf16.msra.mxu0 (!%p192_p3), %v1462_v1  ;;  %1430 = vmatpush3.bf16.msra.mxu1 (!%p192_p3), %v1462_v1 }
   0xd   : > { %1377 = vmatprep.subr.bf16.mxu0 (!%p192_p3), %v1463_v2  ;;  %1423 = vmatprep.subr.bf16.mxu1 (!%p192_p3), %v1463_v2 }
   0xe   : > { %s1718_s21 = smov (!%p226_p4, %s1158_s21), 63 }
   0xf   : > { %s1159_s26 = sshll.u32 %s1718_s21, 2 }
  0x10   : > { %s1569_s29 = scalar_lea.vmem %s1708_s0, %s1159_s26  ;;  %1378 = vmatpush3.bf16.msra.mxu0 %v1463_v2  ;;  %1431 = vmatpush3.bf16.msra.mxu1 %v1463_v2  ;;  %s1635_s24 = scalar_lea.vmem %s1712_s4, %s1159_s26 }
  0x11   : > { %v1469_v4 = vld [vmem:[%s1569_s29] sm:$0xff]   ;;  %1379 = vmatprep.subr.bf16.mxu0 %v1464_v3  ;;  %1424 = vmatprep.subr.bf16.mxu1 %v1464_v3  ;;  %v1471_v10 = vld [vmem:[%s1569_s29 + $0x8] sm:$0xff]   ;;  %v1473_v12 = vld [vmem:[%s1569_s29 + $0x10] sm:$0xff]  }
  0x12   : > { %v1470_v5 = vld [vmem:[%s1569_s29 + $0x40] sm:$0xff]   ;;  %1389 = vmatprep.mubr.bf16.mxu0 %v1469_v4  ;;  %v1472_v11 = vld [vmem:[%s1569_s29 + $0x48] sm:$0xff]   ;;  %v1474_v13 = vld [vmem:[%s1569_s29 + $0x50] sm:$0xff]  }
  0x13   : > { %1405 = vmatprep.mubr.bf16.mxu1 %v1470_v5  ;;  %v1475_v14 = vld [vmem:[%s1569_s29 + $0x18] sm:$0xff]   ;;  %v1477_v16 = vld [vmem:[%s1569_s29 + $0x20] sm:$0xff]   ;;  %v1479_v18 = vld [vmem:[%s1569_s29 + $0x28] sm:$0xff]  }
  0x14   : > { %1380 = vmatpush3.bf16.msra.mxu0 %v1464_v3  ;;  %1432 = vmatpush3.bf16.msra.mxu1 %v1464_v3  ;;  %v1476_v15 = vld [vmem:[%s1569_s29 + $0x58] sm:$0xff]   ;;  %v1478_v17 = vld [vmem:[%s1569_s29 + $0x60] sm:$0xff]   ;;  %v1480_v19 = vld [vmem:[%s1569_s29 + $0x68] sm:$0xff]  }
  0x15   : > { %1381 = vmatprep.subr.bf16.mxu0 %v1465_v6  ;;  %1425 = vmatprep.subr.bf16.mxu1 %v1465_v6  ;;  %v1481_v20 = vld [vmem:[%s1569_s29 + $0x30] sm:$0xff]   ;;  %v1483_v22 = vld [vmem:[%s1569_s29 + $0x38] sm:$0xff]  }
  0x16   : > { %v1482_v21 = vld [vmem:[%s1569_s29 + $0x70] sm:$0xff]   ;;  %v1484_v23 = vld [vmem:[%s1569_s29 + $0x78] sm:$0xff]  }
  0x18   : > { %1382 = vmatpush3.bf16.msra.mxu0 %v1465_v6  ;;  %1433 = vmatpush3.bf16.msra.mxu1 %v1465_v6 }
  0x19   : > { %1383 = vmatprep.subr.bf16.mxu0 %v1466_v7  ;;  %1426 = vmatprep.subr.bf16.mxu1 %v1466_v7 }
  0x1c   : > { %1384 = vmatpush3.bf16.msra.mxu0 %v1466_v7  ;;  %1434 = vmatpush3.bf16.msra.mxu1 %v1466_v7 }
  0x1d   : > { %1385 = vmatprep.subr.bf16.mxu0 %v1467_v8  ;;  %1427 = vmatprep.subr.bf16.mxu1 %v1467_v8 }
  0x20   : > { %1386 = vmatpush3.bf16.msra.mxu0 %v1467_v8  ;;  %1435 = vmatpush3.bf16.msra.mxu1 %v1467_v8 }
  0x21   : > { %1387 = vmatprep.subr.bf16.mxu0 %v1468_v9  ;;  %1428 = vmatprep.subr.bf16.mxu1 %v1468_v9 }
  0x24   : > { %1388 = vmatpush3.bf16.msra.mxu0 %v1468_v9  ;;  %1436 = vmatpush3.bf16.msra.mxu1 %v1468_v9 }
  0x27   : > { %1390 = vmatmul.mubr.bf16.vlgmr.msra.gmra.mrb[0].mxu0 %v1471_v10  ;;  %1406 = vmatmul.mubr.bf16.vlgmr.msra.gmra.mrb[0].mxu1 %v1472_v11 }
  0x28   : > { %1393 = vmatprep.mubr.bf16.mxu0 %v1473_v12  ;;  %1409 = vmatprep.mubr.bf16.mxu1 %v1474_v13 }
  0x2f   : > { %1394 = vmatmul.mubr.bf16.gmra.mrb[4].mxu0 %v1475_v14  ;;  %1410 = vmatmul.mubr.bf16.gmra.mrb[4].mxu1 %v1476_v15 }
  0x30   : > { %1397 = vmatprep.mubr.bf16.mxu0 %v1477_v16  ;;  %1413 = vmatprep.mubr.bf16.mxu1 %v1478_v17 }
  0x37   : > { %1398 = vmatmul.mubr.bf16.gmra.mrb[8].mxu0 %v1479_v18  ;;  %1414 = vmatmul.mubr.bf16.gmra.mrb[8].mxu1 %v1480_v19 }
  0x38   : > { %1401 = vmatprep.mubr.bf16.mxu0 %v1481_v20  ;;  %1417 = vmatprep.mubr.bf16.mxu1 %v1482_v21 }
  0x3f   : > { %1402 = vmatmul.mubr.bf16.gmra.mrb[12].mxu0 %v1483_v22  ;;  %1418 = vmatmul.mubr.bf16.gmra.mrb[12].mxu1 %v1484_v23 }
  0xfa   : > { %v1391_v25 = vpop.f32.mrb[0].mxu0  ;;  %v1407_v27 = vpop.f32.mrb[0].mxu1 }
  0xfb   : > { %v776_v28 = vmul.f32 %v1391_v25, %v1605_v24  ;;  %v792_v29 = vmul.f32 %v1407_v27, %v1605_v24  ;;  %v541_v30 = vpop.f32.mrb[1].mxu0  ;;  %v605_v31 = vpop.f32.mrb[1].mxu1 }
  0xfc   : > { %v774_v32 = vmul.f32 %v1605_v24, %v541_v30  ;;  %v790_v33 = vmul.f32 %v1605_v24, %v605_v31  ;;  %v1392_v34 = vpop.f32.mrb[2].mxu0  ;;  %v1408_v35 = vpop.f32.mrb[2].mxu1 }
  0xfd   : > { %v815_v36 = vadd.f32 %v1610_v26, %v776_v28  ;;  %v831_v37 = vadd.f32 %v1610_v26, %v792_v29  ;;  %v777_v38 = vmul.f32 %v1392_v34, %v1605_v24  ;;  %v793_v39 = vmul.f32 %v1408_v35, %v1605_v24  ;;  %v544_v40 = vpop.f32.mrb[3].mxu0  ;;  %v608_v41 = vpop.f32.mrb[3].mxu1 }
  0xfe   : > { %v813_v42 = vadd.f32 %v1610_v26, %v774_v32  ;;  %v829_v43 = vadd.f32 %v1610_v26, %v790_v33  ;;  %v775_v44 = vmul.f32 %v1605_v24, %v544_v40  ;;  %v791_v45 = vmul.f32 %v1605_v24, %v608_v41 }
  0xff   : > { %v847_v46 = vmul.f32 0.2, %v815_v36  ;;  %v863_v47 = vmul.f32 0.2, %v831_v37  ;;  %v816_v48 = vadd.f32 %v1610_v26, %v777_v38  ;;  %v832_v49 = vadd.f32 %v1610_v26, %v793_v39 }
 0x100   : > { %v845_v50 = vmul.f32 0.2, %v813_v42  ;;  %v861_v51 = vmul.f32 0.2, %v829_v43  ;;  %v814_v52 = vadd.f32 %v1610_v26, %v775_v44  ;;  %v830_v53 = vadd.f32 %v1610_v26, %v791_v45 }
 0x101   : > { %v879_v54 = vmax.f32 %v815_v36, %v847_v46  ;;  %v895_v55 = vmax.f32 %v831_v37, %v863_v47  ;;  %v848_v56 = vmul.f32 0.2, %v816_v48  ;;  %v864_v57 = vmul.f32 0.2, %v832_v49 }
 0x102   : > { %v877_v58 = vmax.f32 %v813_v42, %v845_v50  ;;  %v893_v59 = vmax.f32 %v829_v43, %v861_v51  ;;  %v846_v60 = vmul.f32 0.2, %v814_v52  ;;  %v862_v61 = vmul.f32 0.2, %v830_v53  ;;  %v1395_v62 = vpop.f32.mrb[4].mxu0  ;;  %v1411_v63 = vpop.f32.mrb[4].mxu1 }
 0x103   : > { %v880_v0 = vmax.f32 %v816_v48, %v848_v56  ;;  %v896_v1 = vmax.f32 %v832_v49, %v864_v57  ;;  %v780_v2 = vmul.f32 %v1395_v62, %v1605_v24  ;;  %v796_v3 = vmul.f32 %v1411_v63, %v1605_v24  ;;  %v557_v4 = vpop.f32.mrb[5].mxu0  ;;  %v621_v5 = vpop.f32.mrb[5].mxu1 }
 0x104   : > { %v878_v6 = vmax.f32 %v814_v52, %v846_v60  ;;  %v894_v7 = vmax.f32 %v830_v53, %v862_v61  ;;  %v778_v8 = vmul.f32 %v1605_v24, %v557_v4  ;;  %v794_v9 = vmul.f32 %v1605_v24, %v621_v5  ;;  %v1396_v10 = vpop.f32.mrb[6].mxu0  ;;  %v1412_v11 = vpop.f32.mrb[6].mxu1 }
 0x105   : > { %v1262_v12 = vpack.c.bf16 %v880_v0, %v879_v54  ;;  %v1302_v13 = vpack.c.bf16 %v896_v1, %v895_v55  ;;  %v819_v14 = vadd.f32 %v1610_v26, %v780_v2  ;;  %v835_v15 = vadd.f32 %v1610_v26, %v796_v3  ;;  %v560_v16 = vpop.f32.mrb[7].mxu0  ;;  %v624_v17 = vpop.f32.mrb[7].mxu1 }
 0x106   : > { %v1257_v18 = vpack.c.bf16 %v878_v6, %v877_v58  ;;  %v1297_v19 = vpack.c.bf16 %v894_v7, %v893_v59  ;;  %v817_v20 = vadd.f32 %v1610_v26, %v778_v8  ;;  %v833_v21 = vadd.f32 %v1610_v26, %v794_v9 }
 0x107   : > { %1334 = vst [vmem:[%s1635_s24 + $0x8] sm:$0xff] %v1262_v12   ;;  %1342 = vst [vmem:[%s1635_s24 + $0x48] sm:$0xff] %v1302_v13   ;;  %v851_v22 = vmul.f32 0.2, %v819_v14  ;;  %v867_v23 = vmul.f32 0.2, %v835_v15  ;;  %v781_v25 = vmul.f32 %v1396_v10, %v1605_v24  ;;  %v797_v27 = vmul.f32 %v1412_v11, %v1605_v24 }
 0x108   : > { %1258 = vst [vmem:[%s1635_s24] sm:$0xff] %v1257_v18   ;;  %1341 = vst [vmem:[%s1635_s24 + $0x40] sm:$0xff] %v1297_v19   ;;  %v849_v28 = vmul.f32 0.2, %v817_v20  ;;  %v779_v29 = vmul.f32 %v1605_v24, %v560_v16  ;;  %v795_v30 = vmul.f32 %v1605_v24, %v624_v17  ;;  %v865_v32 = vmul.f32 0.2, %v833_v21 }
 0x109   : > { %v883_v31 = vmax.f32 %v819_v14, %v851_v22  ;;  %v820_v33 = vadd.f32 %v1610_v26, %v781_v25  ;;  %v836_v34 = vadd.f32 %v1610_v26, %v797_v27  ;;  %v899_v35 = vmax.f32 %v835_v15, %v867_v23 }
 0x10a   : > { %v881_v36 = vmax.f32 %v817_v20, %v849_v28  ;;  %v818_v37 = vadd.f32 %v1610_v26, %v779_v29  ;;  %v834_v38 = vadd.f32 %v1610_v26, %v795_v30  ;;  %v1399_v39 = vpop.f32.mrb[8].mxu0  ;;  %v1415_v40 = vpop.f32.mrb[8].mxu1  ;;  %v897_v59 = vmax.f32 %v833_v21, %v865_v32 }
 0x10b   : > { %v852_v41 = vmul.f32 0.2, %v820_v33  ;;  %v868_v42 = vmul.f32 0.2, %v836_v34  ;;  %v784_v43 = vmul.f32 %v1399_v39, %v1605_v24  ;;  %v800_v44 = vmul.f32 %v1415_v40, %v1605_v24  ;;  %v573_v45 = vpop.f32.mrb[9].mxu0  ;;  %v637_v46 = vpop.f32.mrb[9].mxu1 }
 0x10c   : > { %v850_v47 = vmul.f32 0.2, %v818_v37  ;;  %v866_v48 = vmul.f32 0.2, %v834_v38  ;;  %v782_v49 = vmul.f32 %v1605_v24, %v573_v45  ;;  %v798_v50 = vmul.f32 %v1605_v24, %v637_v46  ;;  %v1400_v51 = vpop.f32.mrb[10].mxu0  ;;  %v1416_v52 = vpop.f32.mrb[10].mxu1 }
 0x10d   : > { %v884_v53 = vmax.f32 %v820_v33, %v852_v41  ;;  %v900_v54 = vmax.f32 %v836_v34, %v868_v42  ;;  %v823_v55 = vadd.f32 %v1610_v26, %v784_v43  ;;  %v839_v56 = vadd.f32 %v1610_v26, %v800_v44  ;;  %v576_v57 = vpop.f32.mrb[11].mxu0  ;;  %v640_v58 = vpop.f32.mrb[11].mxu1 }
 0x10e   : > { %v882_v60 = vmax.f32 %v818_v37, %v850_v47  ;;  %v898_v61 = vmax.f32 %v834_v38, %v866_v48  ;;  %v821_v62 = vadd.f32 %v1610_v26, %v782_v49  ;;  %v837_v1 = vadd.f32 %v1610_v26, %v798_v50 }
 0x10f   : > { %v1272_v63 = vpack.c.bf16 %v884_v53, %v883_v31  ;;  %v1312_v0 = vpack.c.bf16 %v900_v54, %v899_v35  ;;  %v855_v4 = vmul.f32 0.2, %v823_v55  ;;  %v871_v5 = vmul.f32 0.2, %v839_v56 }
 0x110   : > { %v1267_v2 = vpack.c.bf16 %v882_v60, %v881_v36  ;;  %v1307_v3 = vpack.c.bf16 %v898_v61, %v897_v59  ;;  %v785_v6 = vmul.f32 %v1400_v51, %v1605_v24  ;;  %v801_v7 = vmul.f32 %v1416_v52, %v1605_v24 }
 0x111   : > { %1336 = vst [vmem:[%s1635_s24 + $0x18] sm:$0xff] %v1272_v63   ;;  %1344 = vst [vmem:[%s1635_s24 + $0x58] sm:$0xff] %v1312_v0   ;;  %v853_v8 = vmul.f32 0.2, %v821_v62  ;;  %v783_v9 = vmul.f32 %v1605_v24, %v576_v57  ;;  %v799_v10 = vmul.f32 %v1605_v24, %v640_v58  ;;  %v869_v13 = vmul.f32 0.2, %v837_v1 }
 0x112   : > { %1335 = vst [vmem:[%s1635_s24 + $0x10] sm:$0xff] %v1267_v2   ;;  %1343 = vst [vmem:[%s1635_s24 + $0x50] sm:$0xff] %v1307_v3   ;;  %v1403_v11 = vpop.f32.mrb[12].mxu0  ;;  %v1419_v12 = vpop.f32.mrb[12].mxu1  ;;  %v824_v14 = vadd.f32 %v1610_v26, %v785_v6  ;;  %v840_v15 = vadd.f32 %v1610_v26, %v801_v7  ;;  %v887_v27 = vmax.f32 %v823_v55, %v855_v4 }
 0x113   : > { %v788_v16 = vmul.f32 %v1403_v11, %v1605_v24  ;;  %v589_v17 = vpop.f32.mrb[13].mxu0  ;;  %v653_v18 = vpop.f32.mrb[13].mxu1  ;;  %v822_v19 = vadd.f32 %v1610_v26, %v783_v9  ;;  %v838_v20 = vadd.f32 %v1610_v26, %v799_v10  ;;  %v804_v21 = vmul.f32 %v1419_v12, %v1605_v24 }
 0x114   : > { %v786_v22 = vmul.f32 %v1605_v24, %v589_v17  ;;  %v1404_v23 = vpop.f32.mrb[14].mxu0  ;;  %v1420_v25 = vpop.f32.mrb[14].mxu1  ;;  %v903_v28 = vmax.f32 %v839_v56, %v871_v5  ;;  %v856_v29 = vmul.f32 0.2, %v824_v14  ;;  %v872_v30 = vmul.f32 0.2, %v840_v15 }
 0x115   : > { %v592_v31 = vpop.f32.mrb[15].mxu0  ;;  %v656_v32 = vpop.f32.mrb[15].mxu1  ;;  %v885_v33 = vmax.f32 %v821_v62, %v853_v8  ;;  %v854_v34 = vmul.f32 0.2, %v822_v19  ;;  %v870_v35 = vmul.f32 0.2, %v838_v20  ;;  %v802_v36 = vmul.f32 %v1605_v24, %v653_v18 }
 0x116   : > { %v901_v37 = vmax.f32 %v837_v1, %v869_v13  ;;  %v888_v38 = vmax.f32 %v824_v14, %v856_v29  ;;  %v904_v39 = vmax.f32 %v840_v15, %v872_v30  ;;  %v827_v40 = vadd.f32 %v1610_v26, %v788_v16 }
 0x117   : > { %v886_v41 = vmax.f32 %v822_v19, %v854_v34  ;;  %v902_v42 = vmax.f32 %v838_v20, %v870_v35  ;;  %v843_v43 = vadd.f32 %v1610_v26, %v804_v21  ;;  %v825_v44 = vadd.f32 %v1610_v26, %v786_v22 }
 0x118   : > { %v1282_v45 = vpack.c.bf16 %v888_v38, %v887_v27  ;;  %v1322_v46 = vpack.c.bf16 %v904_v39, %v903_v28  ;;  %v841_v49 = vadd.f32 %v1610_v26, %v802_v36  ;;  %v789_v50 = vmul.f32 %v1404_v23, %v1605_v24 }
 0x119   : > { %v1277_v47 = vpack.c.bf16 %v886_v41, %v885_v33  ;;  %v1317_v48 = vpack.c.bf16 %v902_v42, %v901_v37  ;;  %v805_v51 = vmul.f32 %v1420_v25, %v1605_v24  ;;  %v787_v52 = vmul.f32 %v1605_v24, %v592_v31 }
 0x11a   : > { %1338 = vst [vmem:[%s1635_s24 + $0x28] sm:$0xff] %v1282_v45   ;;  %1346 = vst [vmem:[%s1635_s24 + $0x68] sm:$0xff] %v1322_v46   ;;  %v803_v53 = vmul.f32 %v1605_v24, %v656_v32  ;;  %v859_v54 = vmul.f32 0.2, %v827_v40  ;;  %v875_v55 = vmul.f32 0.2, %v843_v43  ;;  %v828_v57 = vadd.f32 %v1610_v26, %v789_v50 }
 0x11b   : > { %1337 = vst [vmem:[%s1635_s24 + $0x20] sm:$0xff] %v1277_v47   ;;  %1345 = vst [vmem:[%s1635_s24 + $0x60] sm:$0xff] %v1317_v48   ;;  %v857_v56 = vmul.f32 0.2, %v825_v44  ;;  %v844_v58 = vadd.f32 %v1610_v26, %v805_v51  ;;  %v826_v59 = vadd.f32 %v1610_v26, %v787_v52  ;;  %v873_v61 = vmul.f32 0.2, %v841_v49 }
 0x11c   : > { %v842_v60 = vadd.f32 %v1610_v26, %v803_v53  ;;  %v860_v62 = vmul.f32 0.2, %v828_v57  ;;  %v891_v24 = vmax.f32 %v827_v40, %v859_v54  ;;  %v907_v1 = vmax.f32 %v843_v43, %v875_v55 }
 0x11d   : > { %v876_v63 = vmul.f32 0.2, %v844_v58  ;;  %v858_v0 = vmul.f32 0.2, %v826_v59  ;;  %v889_v3 = vmax.f32 %v825_v44, %v857_v56  ;;  %v905_v7 = vmax.f32 %v841_v49, %v873_v61 }
 0x11e   : > { %v874_v2 = vmul.f32 0.2, %v842_v60  ;;  %v892_v4 = vmax.f32 %v828_v57, %v860_v62 }
 0x11f   : > { %v908_v5 = vmax.f32 %v844_v58, %v876_v63  ;;  %v890_v6 = vmax.f32 %v826_v59, %v858_v0 }
 0x120   : > { %v906_v8 = vmax.f32 %v842_v60, %v874_v2  ;;  %v1292_v9 = vpack.c.bf16 %v892_v4, %v891_v24 }
 0x121   : > { %v1332_v10 = vpack.c.bf16 %v908_v5, %v907_v1  ;;  %v1287_v26 = vpack.c.bf16 %v890_v6, %v889_v3 }
 0x122   : > { %v1327_v11 = vpack.c.bf16 %v906_v8, %v905_v7  ;;  %1340 = vst [vmem:[%s1635_s24 + $0x38] sm:$0xff] %v1292_v9  }
 0x123   : > { %1348 = vst [vmem:[%s1635_s24 + $0x78] sm:$0xff] %v1332_v10   ;;  %1339 = vst [vmem:[%s1635_s24 + $0x30] sm:$0xff] %v1287_v26  }
 0x124   : > { %1347 = vst [vmem:[%s1635_s24 + $0x70] sm:$0xff] %v1327_v11  }
 0x125 PF: > { %s14_s17 = sadd.s32 1, %s1507_s17   ;;  %s1713_s15 = smov %s1503_s16 }
 0x126   : > { %p11_p5 = scmp.ge.s32.totalorder %s14_s17, 4   ;;  %s1714_s16 = smov %s1716_s18 }
 0x128   :  { %13 = sbr.rel (!%p11_p5) target bundleno = 2 (0x2), region = 77 }

// kernel: _lambda_.10
= control target key start
LH: loop header
LB: loop body
LE: loop exit
PB: predicated region body
PF: predicated region fallthrough
CT: control target
= control target key end

     0   :  { %s438_s0 = inlined_call_operand.vmem [shape: bf16[128,128], index: 0, kind: input, shape index: {}]   ;;  %s439_s1 = inlined_call_operand.vmem [shape: f32[1,128], index: 1, kind: input, shape index: {}]   ;;  %s440_s2 = inlined_call_operand.vmem [shape: f32[1,128], index: 2, kind: input, shape index: {}]   ;;  %s441_s3 = inlined_call_operand.vmem [shape: bf16[128,128], index: 3, kind: output, shape index: {}]  }
   0x1   :  { %v243_v0 = vld [vmem:[%s438_s0] sm:$0xff]   ;;  %v314_v4 = vld [vmem:[%s438_s0 + $0x8] sm:$0xff]   ;;  %v315_v5 = vld [vmem:[%s438_s0 + $0x10] sm:$0xff]  }
   0x2   :  { %v354_v1 = vld [vmem:[%s439_s1] ss:$0 sm:$0xff]  ;;  %v244_v2 = vunpack.c.l.bf16 %v243_v0  ;;  %v245_v3 = vunpack.c.h.bf16 %v243_v0  ;;  %v316_v6 = vld [vmem:[%s438_s0 + $0x18] sm:$0xff]   ;;  %v248_v8 = vunpack.c.l.bf16 %v314_v4  ;;  %v249_v9 = vunpack.c.h.bf16 %v314_v4  ;;  %v318_v41 = vld [vmem:[%s438_s0 + $0x28] sm:$0xff]  }
   0x3   :  { %v368_v7 = vld [vmem:[%s440_s2] ss:$0 sm:$0xff]  ;;  %v252_v10 = vunpack.c.l.bf16 %v315_v5  ;;  %v253_v11 = vunpack.c.h.bf16 %v315_v5  ;;  %v256_v14 = vunpack.c.l.bf16 %v316_v6  ;;  %v257_v15 = vunpack.c.h.bf16 %v316_v6  ;;  %v319_v46 = vld [vmem:[%s438_s0 + $0x30] sm:$0xff]   ;;  %v320_v55 = vld [vmem:[%s438_s0 + $0x38] sm:$0xff]  }
   0x4   :  { %v53_v12 = vmul.f32 %v244_v2, %v354_v1  ;;  %v54_v13 = vmul.f32 %v245_v3, %v354_v1  ;;  %v55_v16 = vmul.f32 %v248_v8, %v354_v1  ;;  %v56_v17 = vmul.f32 %v249_v9, %v354_v1  ;;  %v317_v24 = vld [vmem:[%s438_s0 + $0x20] sm:$0xff]  }
   0x5   :  { %v57_v18 = vmul.f32 %v252_v10, %v354_v1  ;;  %v58_v19 = vmul.f32 %v253_v11, %v354_v1  ;;  %v59_v22 = vmul.f32 %v256_v14, %v354_v1  ;;  %v60_v23 = vmul.f32 %v257_v15, %v354_v1 }
   0x6   :  { %v76_v20 = vadd.f32 %v368_v7, %v53_v12  ;;  %v77_v21 = vadd.f32 %v368_v7, %v54_v13  ;;  %v78_v25 = vadd.f32 %v368_v7, %v55_v16  ;;  %v79_v26 = vadd.f32 %v368_v7, %v56_v17 }
   0x7   :  { %v80_v27 = vadd.f32 %v368_v7, %v57_v18  ;;  %v81_v28 = vadd.f32 %v368_v7, %v58_v19  ;;  %v82_v31 = vadd.f32 %v368_v7, %v59_v22  ;;  %v83_v32 = vadd.f32 %v368_v7, %v60_v23 }
   0x8   :  { %v92_v29 = vmul.f32 0.2, %v76_v20  ;;  %v93_v30 = vmul.f32 0.2, %v77_v21  ;;  %v94_v33 = vmul.f32 0.2, %v78_v25  ;;  %v260_v36 = vunpack.c.l.bf16 %v317_v24 }
   0x9   :  { %v95_v34 = vmul.f32 0.2, %v79_v26  ;;  %v96_v35 = vmul.f32 0.2, %v80_v27  ;;  %v97_v39 = vmul.f32 0.2, %v81_v28  ;;  %v261_v50 = vunpack.c.h.bf16 %v317_v24 }
   0xa   :  { %v108_v37 = vmax.f32 %v76_v20, %v92_v29  ;;  %v109_v38 = vmax.f32 %v77_v21, %v93_v30  ;;  %v98_v40 = vmul.f32 0.2, %v82_v31  ;;  %v110_v42 = vmax.f32 %v78_v25, %v94_v33 }
   0xb   :  { %v111_v43 = vmax.f32 %v79_v26, %v95_v34  ;;  %v112_v44 = vmax.f32 %v80_v27, %v96_v35  ;;  %v99_v45 = vmul.f32 0.2, %v83_v32  ;;  %v113_v48 = vmax.f32 %v81_v28, %v97_v39 }
   0xc   :  { %v277_v47 = vpack.c.bf16 %v109_v38, %v108_v37  ;;  %v114_v49 = vmax.f32 %v82_v31, %v98_v40  ;;  %v61_v53 = vmul.f32 %v260_v36, %v354_v1  ;;  %v264_v54 = vunpack.c.l.bf16 %v318_v41 }
   0xd   :  { %v282_v51 = vpack.c.bf16 %v111_v43, %v110_v42  ;;  %v115_v52 = vmax.f32 %v83_v32, %v99_v45  ;;  %v287_v56 = vpack.c.bf16 %v113_v48, %v112_v44  ;;  %v62_v57 = vmul.f32 %v261_v50, %v354_v1 }
   0xe   :  { %278 = vst [vmem:[%s441_s3] sm:$0xff] %v277_v47   ;;  %v265_v58 = vunpack.c.h.bf16 %v318_v41  ;;  %v268_v59 = vunpack.c.l.bf16 %v319_v46  ;;  %v84_v61 = vadd.f32 %v368_v7, %v61_v53  ;;  %v63_v62 = vmul.f32 %v264_v54, %v354_v1 }
   0xf   :  { %321 = vst [vmem:[%s441_s3 + $0x8] sm:$0xff] %v282_v51   ;;  %v292_v60 = vpack.c.bf16 %v115_v52, %v114_v49  ;;  %v269_v63 = vunpack.c.h.bf16 %v319_v46  ;;  %322 = vst [vmem:[%s441_s3 + $0x10] sm:$0xff] %v287_v56   ;;  %v85_v0 = vadd.f32 %v368_v7, %v62_v57  ;;  %v272_v4 = vunpack.c.l.bf16 %v320_v55 }
  0x10   :  { %v64_v2 = vmul.f32 %v265_v58, %v354_v1  ;;  %v65_v3 = vmul.f32 %v268_v59, %v354_v1  ;;  %v100_v5 = vmul.f32 0.2, %v84_v61  ;;  %v86_v6 = vadd.f32 %v368_v7, %v63_v62 }
  0x11   :  { %323 = vst [vmem:[%s441_s3 + $0x18] sm:$0xff] %v292_v60   ;;  %v66_v8 = vmul.f32 %v269_v63, %v354_v1  ;;  %v273_v9 = vunpack.c.h.bf16 %v320_v55  ;;  %v101_v10 = vmul.f32 0.2, %v85_v0  ;;  %v67_v13 = vmul.f32 %v272_v4, %v354_v1 }
  0x12   :  { %v87_v11 = vadd.f32 %v368_v7, %v64_v2  ;;  %v88_v12 = vadd.f32 %v368_v7, %v65_v3  ;;  %v116_v14 = vmax.f32 %v84_v61, %v100_v5  ;;  %v102_v15 = vmul.f32 0.2, %v86_v6 }
  0x13   :  { %v89_v16 = vadd.f32 %v368_v7, %v66_v8  ;;  %v68_v17 = vmul.f32 %v273_v9, %v354_v1  ;;  %v117_v18 = vmax.f32 %v85_v0, %v101_v10  ;;  %v90_v21 = vadd.f32 %v368_v7, %v67_v13 }
  0x14   :  { %v103_v19 = vmul.f32 0.2, %v87_v11  ;;  %v104_v20 = vmul.f32 0.2, %v88_v12  ;;  %v118_v22 = vmax.f32 %v86_v6, %v102_v15 }
  0x15   :  { %v105_v23 = vmul.f32 0.2, %v89_v16  ;;  %v91_v24 = vadd.f32 %v368_v7, %v68_v17  ;;  %v297_v25 = vpack.c.bf16 %v117_v18, %v116_v14  ;;  %v106_v28 = vmul.f32 0.2, %v90_v21 }
  0x16   :  { %v119_v26 = vmax.f32 %v87_v11, %v103_v19  ;;  %v120_v27 = vmax.f32 %v88_v12, %v104_v20 }
  0x17   :  { %v121_v29 = vmax.f32 %v89_v16, %v105_v23  ;;  %v107_v30 = vmul.f32 0.2, %v91_v24  ;;  %324 = vst [vmem:[%s441_s3 + $0x20] sm:$0xff] %v297_v25   ;;  %v122_v31 = vmax.f32 %v90_v21, %v106_v28 }
  0x18   :  { %v302_v1 = vpack.c.bf16 %v119_v26, %v118_v22 }
  0x19   :  { %v307_v32 = vpack.c.bf16 %v121_v29, %v120_v27  ;;  %v123_v33 = vmax.f32 %v91_v24, %v107_v30 }
  0x1a   :  { %325 = vst [vmem:[%s441_s3 + $0x28] sm:$0xff] %v302_v1  }
  0x1b   :  { %326 = vst [vmem:[%s441_s3 + $0x30] sm:$0xff] %v307_v32   ;;  %v312_v7 = vpack.c.bf16 %v123_v33, %v122_v31 }
  0x1d   :  { %327 = vst [vmem:[%s441_s3 + $0x38] sm:$0xff] %v312_v7  }

// kernel: _lambda_.9
= control target key start
LH: loop header
LB: loop body
LE: loop exit
PB: predicated region body
PF: predicated region fallthrough
CT: control target
= control target key end

     0   :  { %s1075_s1 = inlined_call_operand.vmem [shape: bf16[256,128], index: 1, kind: input, shape index: {}]   ;;  %s1076_s0 = inlined_call_operand.vmem [shape: bf16[128,256], index: 0, kind: input, shape index: {}]   ;;  %s1077_s2 = inlined_call_operand.vmem [shape: f32[1,128], index: 2, kind: input, shape index: {}]   ;;  %s1078_s3 = inlined_call_operand.vmem [shape: f32[1,128], index: 3, kind: input, shape index: {}]   ;;  %s1079_s4 = inlined_call_operand.vmem [shape: bf16[128,128], index: 4, kind: output, shape index: {0}]   ;;  %s1080_s5 = inlined_call_operand.vmem [shape: f32[8,128], index: 5, kind: output, shape index: {1}]   ;;  %s1081_s6 = inlined_call_operand.vmem [shape: f32[8,128], index: 6, kind: output, shape index: {2}]  }
   0x1   :  { %v808_v0 = vld [vmem:[%s1075_s1 + $0x40] sm:$0xff]   ;;  %v810_v2 = vld [vmem:[%s1075_s1 + $0x48] sm:$0xff]   ;;  %v812_v4 = vld [vmem:[%s1075_s1 + $0x50] sm:$0xff]  }
   0x2   :  { %v809_v1 = vld [vmem:[%s1075_s1] sm:$0xff]   ;;  %728 = vmatprep.subr.bf16.mxu0 %v808_v0  ;;  %792 = vmatprep.subr.bf16.mxu1 %v808_v0  ;;  %v811_v3 = vld [vmem:[%s1075_s1 + $0x8] sm:$0xff]   ;;  %v813_v5 = vld [vmem:[%s1075_s1 + $0x10] sm:$0xff]  }
   0x3   :  { %729 = vmatpush3.bf16.msra.mxu0 %v809_v1  ;;  %800 = vmatpush3.bf16.msra.mxu1 %v809_v1  ;;  %v814_v6 = vld [vmem:[%s1075_s1 + $0x58] sm:$0xff]   ;;  %v816_v8 = vld [vmem:[%s1075_s1 + $0x60] sm:$0xff]   ;;  %v818_v10 = vld [vmem:[%s1075_s1 + $0x68] sm:$0xff]  }
   0x4   :  { %730 = vmatprep.subr.bf16.mxu0 %v810_v2  ;;  %793 = vmatprep.subr.bf16.mxu1 %v810_v2  ;;  %v815_v7 = vld [vmem:[%s1075_s1 + $0x18] sm:$0xff]   ;;  %v817_v9 = vld [vmem:[%s1075_s1 + $0x20] sm:$0xff]   ;;  %v819_v12 = vld [vmem:[%s1075_s1 + $0x28] sm:$0xff]  }
   0x5   :  { %v826_v11 = vld [vmem:[%s1076_s0 + $0x4] ss:$8 sps:$4 sm:$0xff]   ;;  %v820_v14 = vld [vmem:[%s1075_s1 + $0x70] sm:$0xff]   ;;  %v822_v16 = vld [vmem:[%s1075_s1 + $0x78] sm:$0xff]  }
   0x6   :  { %v832_v13 = vld [vmem:[%s1076_s0 + $0x44] ss:$8 sps:$4 sm:$0xff]   ;;  %313 = vmatprep.mubr.bf16.mxu0 %v826_v11  ;;  %v821_v15 = vld [vmem:[%s1075_s1 + $0x30] sm:$0xff]   ;;  %v823_v17 = vld [vmem:[%s1075_s1 + $0x38] sm:$0xff]  }
   0x7   :  { %731 = vmatpush3.bf16.msra.mxu0 %v811_v3  ;;  %801 = vmatpush3.bf16.msra.mxu1 %v811_v3  ;;  %v824_v18 = vld [vmem:[%s1076_s0] ss:$8 sps:$4 sm:$0xff]   ;;  %v827_v20 = vld [vmem:[%s1076_s0 + $0x14] ss:$8 sps:$4 sm:$0xff]   ;;  %v829_v22 = vld [vmem:[%s1076_s0 + $0x10] ss:$8 sps:$4 sm:$0xff]  }
   0x8   :  { %732 = vmatprep.subr.bf16.mxu0 %v812_v4  ;;  %794 = vmatprep.subr.bf16.mxu1 %v812_v4  ;;  %v830_v19 = vld [vmem:[%s1076_s0 + $0x40] ss:$8 sps:$4 sm:$0xff]   ;;  %v836_v21 = vld [vmem:[%s1076_s0 + $0x54] ss:$8 sps:$4 sm:$0xff]   ;;  %v838_v23 = vld [vmem:[%s1076_s0 + $0x50] ss:$8 sps:$4 sm:$0xff]  }
   0x9   :  { %345 = vmatprep.mubr.bf16.mxu1 %v832_v13  ;;  %v833_v24 = vld [vmem:[%s1076_s0 + $0x24] ss:$8 sps:$4 sm:$0xff]   ;;  %v835_v26 = vld [vmem:[%s1076_s0 + $0x20] ss:$8 sps:$4 sm:$0xff]   ;;  %v839_v28 = vld [vmem:[%s1076_s0 + $0x34] ss:$8 sps:$4 sm:$0xff]  }
   0xa   :  { %v842_v25 = vld [vmem:[%s1076_s0 + $0x64] ss:$8 sps:$4 sm:$0xff]   ;;  %v844_v27 = vld [vmem:[%s1076_s0 + $0x60] ss:$8 sps:$4 sm:$0xff]   ;;  %v845_v29 = vld [vmem:[%s1076_s0 + $0x74] ss:$8 sps:$4 sm:$0xff]  }
   0xb   :  { %733 = vmatpush3.bf16.msra.mxu0 %v813_v5  ;;  %802 = vmatpush3.bf16.msra.mxu1 %v813_v5  ;;  %v841_v30 = vld [vmem:[%s1076_s0 + $0x30] ss:$8 sps:$4 sm:$0xff]   ;;  %v982_v35 = vld [vmem:[%s1077_s2] ss:$0 sm:$0xff] }
   0xc   :  { %734 = vmatprep.subr.bf16.mxu0 %v814_v6  ;;  %795 = vmatprep.subr.bf16.mxu1 %v814_v6  ;;  %v847_v31 = vld [vmem:[%s1076_s0 + $0x70] ss:$8 sps:$4 sm:$0xff]   ;;  %v987_v41 = vld [vmem:[%s1078_s3] ss:$0 sm:$0xff] }
   0xf   :  { %735 = vmatpush3.bf16.msra.mxu0 %v815_v7  ;;  %803 = vmatpush3.bf16.msra.mxu1 %v815_v7 }
  0x10   :  { %736 = vmatprep.subr.bf16.mxu0 %v816_v8  ;;  %796 = vmatprep.subr.bf16.mxu1 %v816_v8 }
  0x13   :  { %737 = vmatpush3.bf16.msra.mxu0 %v817_v9  ;;  %804 = vmatpush3.bf16.msra.mxu1 %v817_v9 }
  0x14   :  { %738 = vmatprep.subr.bf16.mxu0 %v818_v10  ;;  %797 = vmatprep.subr.bf16.mxu1 %v818_v10 }
  0x17   :  { %739 = vmatpush3.bf16.msra.mxu0 %v819_v12  ;;  %805 = vmatpush3.bf16.msra.mxu1 %v819_v12 }
  0x18   :  { %740 = vmatprep.subr.bf16.mxu0 %v820_v14  ;;  %798 = vmatprep.subr.bf16.mxu1 %v820_v14 }
  0x1b   :  { %741 = vmatpush3.bf16.msra.mxu0 %v821_v15  ;;  %806 = vmatpush3.bf16.msra.mxu1 %v821_v15 }
  0x1c   :  { %742 = vmatprep.subr.bf16.mxu0 %v822_v16  ;;  %799 = vmatprep.subr.bf16.mxu1 %v822_v16 }
  0x1f   :  { %743 = vmatpush3.bf16.msra.mxu0 %v823_v17  ;;  %807 = vmatpush3.bf16.msra.mxu1 %v823_v17 }
  0x22   :  { %314 = vmatmul.mubr.bf16.vlgmr.msra.gmra.mrb[0].mxu0 %v824_v18  ;;  %346 = vmatmul.mubr.bf16.vlgmr.msra.gmra.mrb[0].mxu1 %v830_v19 }
  0x23   :  { %321 = vmatprep.mubr.bf16.mxu0 %v827_v20  ;;  %353 = vmatprep.mubr.bf16.mxu1 %v836_v21 }
  0x2a   :  { %322 = vmatmul.mubr.bf16.gmra.mrb[4].mxu0 %v829_v22  ;;  %354 = vmatmul.mubr.bf16.gmra.mrb[4].mxu1 %v838_v23 }
  0x2b   :  { %329 = vmatprep.mubr.bf16.mxu0 %v833_v24  ;;  %361 = vmatprep.mubr.bf16.mxu1 %v842_v25 }
  0x32   :  { %330 = vmatmul.mubr.bf16.gmra.mrb[8].mxu0 %v835_v26  ;;  %362 = vmatmul.mubr.bf16.gmra.mrb[8].mxu1 %v844_v27 }
  0x33   :  { %337 = vmatprep.mubr.bf16.mxu0 %v839_v28  ;;  %369 = vmatprep.mubr.bf16.mxu1 %v845_v29 }
  0x3a   :  { %338 = vmatmul.mubr.bf16.gmra.mrb[12].mxu0 %v841_v30  ;;  %370 = vmatmul.mubr.bf16.gmra.mrb[12].mxu1 %v847_v31 }
  0xf5   :  { %v744_v32 = vpop.f32.mrb[0].mxu0  ;;  %v768_v33 = vpop.f32.mrb[0].mxu1 }
  0xf6   :  { %v745_v34 = vpop.f32.mrb[1].mxu0  ;;  %v769_v36 = vpop.f32.mrb[1].mxu1 }
  0xf7   :  { %v746_v37 = vadd.f32 %v745_v34, %v744_v32  ;;  %v747_v38 = vpop.f32.mrb[2].mxu0  ;;  %v770_v39 = vadd.f32 %v769_v36, %v768_v33  ;;  %v771_v40 = vpop.f32.mrb[2].mxu1 }
  0xf8   :  { %v748_v42 = vpop.f32.mrb[3].mxu0  ;;  %v772_v43 = vpop.f32.mrb[3].mxu1 }
  0xf9   :  { %v436_v44 = vmul.f32 %v746_v37, %v982_v35  ;;  %v749_v45 = vadd.f32 %v748_v42, %v747_v38  ;;  %v444_v46 = vmul.f32 %v770_v39, %v982_v35  ;;  %v773_v47 = vadd.f32 %v772_v43, %v771_v40 }
  0xfb   :  { %v459_v48 = vadd.f32 %v987_v41, %v436_v44  ;;  %v437_v49 = vmul.f32 %v749_v45, %v982_v35  ;;  %v445_v50 = vmul.f32 %v773_v47, %v982_v35  ;;  %v995_v51 = vadd.f32 %v987_v41, %v444_v46 }
  0xfd   :  { %v460_v52 = vadd.f32 %v987_v41, %v437_v49  ;;  %v750_v53 = vpop.f32.mrb[4].mxu0  ;;  %v999_v54 = vadd.f32 %v987_v41, %v445_v50  ;;  %v774_v55 = vpop.f32.mrb[4].mxu1  ;;  %v491_v56 = vmul.f32 %v459_v48, %v459_v48 }
  0xfe   :  { %v751_v57 = vpop.f32.mrb[5].mxu0  ;;  %v775_v58 = vpop.f32.mrb[5].mxu1 }
  0xff   :  { %v475_v59 = vadd.f32 %v460_v52, %v459_v48  ;;  %v492_v60 = vmul.f32 %v460_v52, %v460_v52  ;;  %v684_v61 = vpack.c.bf16 %v460_v52, %v459_v48  ;;  %v752_v62 = vadd.f32 %v751_v57, %v750_v53  ;;  %v753_v63 = vpop.f32.mrb[6].mxu0  ;;  %v777_v0 = vpop.f32.mrb[6].mxu1 }
 0x100   :  { %v754_v1 = vpop.f32.mrb[7].mxu0  ;;  %v704_v2 = vpack.c.bf16 %v999_v54, %v995_v51  ;;  %v776_v3 = vadd.f32 %v775_v58, %v774_v55  ;;  %v778_v4 = vpop.f32.mrb[7].mxu1 }
 0x101   :  { %v507_v5 = vadd.f32 %v492_v60, %v491_v56  ;;  %685 = vst [vmem:[%s1079_s4] sm:$0xff] %v684_v61   ;;  %v438_v6 = vmul.f32 %v752_v62, %v982_v35  ;;  %v755_v7 = vadd.f32 %v754_v1, %v753_v63  ;;  %v779_v8 = vadd.f32 %v778_v4, %v777_v0 }
 0x102   :  { %724 = vst [vmem:[%s1079_s4 + $0x20] sm:$0xff] %v704_v2   ;;  %v446_v9 = vmul.f32 %v776_v3, %v982_v35 }
 0x103   :  { %v461_v10 = vadd.f32 %v987_v41, %v438_v6  ;;  %v439_v11 = vmul.f32 %v755_v7, %v982_v35  ;;  %v447_v12 = vmul.f32 %v779_v8, %v982_v35 }
 0x104   :  { %v1015_v13 = vadd.f32 %v987_v41, %v446_v9 }
 0x105   :  { %v476_v14 = vadd.f32 %v475_v59, %v461_v10  ;;  %v493_v15 = vmul.f32 %v461_v10, %v461_v10  ;;  %v462_v16 = vadd.f32 %v987_v41, %v439_v11  ;;  %v756_v17 = vpop.f32.mrb[8].mxu0  ;;  %v1019_v18 = vadd.f32 %v987_v41, %v447_v12  ;;  %v780_v19 = vpop.f32.mrb[8].mxu1 }
 0x106   :  { %v757_v20 = vpop.f32.mrb[9].mxu0  ;;  %v781_v21 = vpop.f32.mrb[9].mxu1 }
 0x107   :  { %v508_v22 = vadd.f32 %v507_v5, %v493_v15  ;;  %v477_v23 = vadd.f32 %v476_v14, %v462_v16  ;;  %v494_v24 = vmul.f32 %v462_v16, %v462_v16  ;;  %v689_v25 = vpack.c.bf16 %v462_v16, %v461_v10  ;;  %v759_v26 = vpop.f32.mrb[10].mxu0  ;;  %v783_v27 = vpop.f32.mrb[10].mxu1 }
 0x108   :  { %v758_v28 = vadd.f32 %v757_v20, %v756_v17  ;;  %v760_v29 = vpop.f32.mrb[11].mxu0  ;;  %v709_v30 = vpack.c.bf16 %v1019_v18, %v1015_v13  ;;  %v782_v31 = vadd.f32 %v781_v21, %v780_v19  ;;  %v784_v32 = vpop.f32.mrb[11].mxu1  ;;  %v499_v21 = vmul.f32 %v995_v51, %v995_v51 }
 0x109   :  { %v509_v33 = vadd.f32 %v508_v22, %v494_v24  ;;  %721 = vst [vmem:[%s1079_s4 + $0x8] sm:$0xff] %v689_v25   ;;  %v761_v34 = vadd.f32 %v760_v29, %v759_v26  ;;  %v785_v36 = vadd.f32 %v784_v32, %v783_v27  ;;  %v501_v25 = vmul.f32 %v1015_v13, %v1015_v13 }
 0x10a   :  { %v440_v37 = vmul.f32 %v758_v28, %v982_v35  ;;  %725 = vst [vmem:[%s1079_s4 + $0x28] sm:$0xff] %v709_v30   ;;  %v448_v38 = vmul.f32 %v782_v31, %v982_v35  ;;  %v502_v27 = vmul.f32 %v1019_v18, %v1019_v18 }
 0x10b   :  { %v441_v39 = vmul.f32 %v761_v34, %v982_v35  ;;  %v449_v40 = vmul.f32 %v785_v36, %v982_v35 }
 0x10c   :  { %v463_v42 = vadd.f32 %v987_v41, %v440_v37  ;;  %v471_v43 = vadd.f32 %v987_v41, %v448_v38 }
 0x10d   :  { %v464_v44 = vadd.f32 %v987_v41, %v441_v39  ;;  %v762_v45 = vpop.f32.mrb[12].mxu0  ;;  %v472_v46 = vadd.f32 %v987_v41, %v449_v40  ;;  %v786_v47 = vpop.f32.mrb[12].mxu1 }
 0x10e   :  { %v478_v48 = vadd.f32 %v477_v23, %v463_v42  ;;  %v495_v49 = vmul.f32 %v463_v42, %v463_v42  ;;  %v763_v50 = vpop.f32.mrb[13].mxu0  ;;  %v787_v52 = vpop.f32.mrb[13].mxu1  ;;  %v503_v31 = vmul.f32 %v471_v43, %v471_v43 }
 0x10f   :  { %v496_v53 = vmul.f32 %v464_v44, %v464_v44  ;;  %v694_v55 = vpack.c.bf16 %v464_v44, %v463_v42  ;;  %v764_v56 = vadd.f32 %v763_v50, %v762_v45  ;;  %v765_v57 = vpop.f32.mrb[14].mxu0  ;;  %v789_v58 = vpop.f32.mrb[14].mxu1  ;;  %v714_v62 = vpack.c.bf16 %v472_v46, %v471_v43 }
 0x110   :  { %v510_v59 = vadd.f32 %v509_v33, %v495_v49  ;;  %v479_v60 = vadd.f32 %v478_v48, %v464_v44  ;;  %v766_v61 = vpop.f32.mrb[15].mxu0  ;;  %v788_v63 = vadd.f32 %v787_v52, %v786_v47  ;;  %v790_v0 = vpop.f32.mrb[15].mxu1  ;;  %v504_v36 = vmul.f32 %v472_v46, %v472_v46 }
 0x111   :  { %722 = vst [vmem:[%s1079_s4 + $0x10] sm:$0xff] %v694_v55   ;;  %v442_v1 = vmul.f32 %v764_v56, %v982_v35  ;;  %v767_v2 = vadd.f32 %v766_v61, %v765_v57  ;;  %v791_v3 = vadd.f32 %v790_v0, %v789_v58  ;;  %726 = vst [vmem:[%s1079_s4 + $0x30] sm:$0xff] %v714_v62  }
 0x112   :  { %v511_v4 = vadd.f32 %v510_v59, %v496_v53  ;;  %v450_v5 = vmul.f32 %v788_v63, %v982_v35 }
 0x113   :  { %v465_v6 = vadd.f32 %v987_v41, %v442_v1  ;;  %v443_v7 = vmul.f32 %v767_v2, %v982_v35  ;;  %v451_v8 = vmul.f32 %v791_v3, %v982_v35  ;;  %v500_v35 = vmul.f32 %v999_v54, %v999_v54 }
 0x114   :  { %v473_v9 = vadd.f32 %v987_v41, %v450_v5 }
 0x115   :  { %v480_v10 = vadd.f32 %v479_v60, %v465_v6  ;;  %v497_v11 = vmul.f32 %v465_v6, %v465_v6  ;;  %v466_v12 = vadd.f32 %v987_v41, %v443_v7  ;;  %v474_v14 = vadd.f32 %v987_v41, %v451_v8 }
 0x117   :  { %v512_v15 = vadd.f32 %v511_v4, %v497_v11  ;;  %v481_v16 = vadd.f32 %v480_v10, %v466_v12  ;;  %v498_v17 = vmul.f32 %v466_v12, %v466_v12  ;;  %v699_v19 = vpack.c.bf16 %v466_v12, %v465_v6 }
 0x118   :  { %v719_v20 = vpack.c.bf16 %v474_v14, %v473_v9  ;;  %v506_v42 = vmul.f32 %v474_v14, %v474_v14 }
 0x119   :  { %v482_v22 = vadd.f32 %v481_v16, %v995_v51  ;;  %v513_v23 = vadd.f32 %v512_v15, %v498_v17  ;;  %723 = vst [vmem:[%s1079_s4 + $0x18] sm:$0xff] %v699_v19  }
 0x11a   :  { %727 = vst [vmem:[%s1079_s4 + $0x38] sm:$0xff] %v719_v20  }
 0x11b   :  { %v483_v41 = vadd.f32 %v482_v22, %v999_v54  ;;  %v514_v24 = vadd.f32 %v513_v23, %v499_v21  ;;  %v505_v54 = vmul.f32 %v473_v9, %v473_v9 }
 0x11d   :  { %v515_v26 = vadd.f32 %v514_v24, %v500_v35  ;;  %v484_v51 = vadd.f32 %v483_v41, %v1015_v13 }
 0x11f   :  { %v485_v28 = vadd.f32 %v484_v51, %v1019_v18  ;;  %v516_v29 = vadd.f32 %v515_v26, %v501_v25 }
 0x121   :  { %v486_v30 = vadd.f32 %v485_v28, %v471_v43  ;;  %v517_v32 = vadd.f32 %v516_v29, %v502_v27 }
 0x123   :  { %v518_v33 = vadd.f32 %v517_v32, %v503_v31  ;;  %v487_v34 = vadd.f32 %v486_v30, %v472_v46 }
 0x125   :  { %v519_v37 = vadd.f32 %v518_v33, %v504_v36  ;;  %v488_v38 = vadd.f32 %v487_v34, %v473_v9 }
 0x127   :  { %v520_v39 = vadd.f32 %v519_v37, %v505_v54  ;;  %v489_v40 = vadd.f32 %v488_v38, %v474_v14 }
 0x129   :  { %490 = vst [vmem:[%s1080_s5] sm:$0xff] %v489_v40  ;;  %v521_v13 = vadd.f32 %v520_v39, %v506_v42 }
 0x12b   :  { %522 = vst [vmem:[%s1081_s6] sm:$0xff] %v521_v13 }

// kernel: _lambda_.12
= control target key start
LH: loop header
LB: loop body
LE: loop exit
PB: predicated region body
PF: predicated region fallthrough
CT: control target
= control target key end

     0   :  { %s144_s0 = inlined_call_operand.vmem [shape: bf16[32,128], index: 0, kind: input, shape index: {}]   ;;  %s145_s1 = inlined_call_operand.vmem [shape: f32[1,128], index: 1, kind: input, shape index: {}]   ;;  %s146_s2 = inlined_call_operand.vmem [shape: f32[1,128], index: 2, kind: input, shape index: {}]   ;;  %s147_s3 = inlined_call_operand.vmem [shape: bf16[32,128], index: 3, kind: output, shape index: {}]  }
   0x1   :  { %v87_v0 = vld [vmem:[%s144_s0] sm:$0xff]   ;;  %v104_v4 = vld [vmem:[%s144_s0 + $0x8] sm:$0xff]  }
   0x2   :  { %v76_v1 = vld [vmem:[%s145_s1] ss:$0 sm:$0xff]  ;;  %v88_v2 = vunpack.c.l.bf16 %v87_v0  ;;  %v89_v3 = vunpack.c.h.bf16 %v87_v0  ;;  %v92_v6 = vunpack.c.l.bf16 %v104_v4  ;;  %v93_v7 = vunpack.c.h.bf16 %v104_v4 }
   0x3   :  { %v77_v5 = vld [vmem:[%s146_s2] ss:$0 sm:$0xff] }
   0x4   :  { %v29_v8 = vmul.f32 %v88_v2, %v76_v1  ;;  %v30_v9 = vmul.f32 %v89_v3, %v76_v1  ;;  %v31_v10 = vmul.f32 %v92_v6, %v76_v1  ;;  %v32_v11 = vmul.f32 %v93_v7, %v76_v1 }
   0x6   :  { %v40_v12 = vadd.f32 %v77_v5, %v29_v8  ;;  %v41_v13 = vadd.f32 %v77_v5, %v30_v9  ;;  %v42_v14 = vadd.f32 %v77_v5, %v31_v10  ;;  %v43_v15 = vadd.f32 %v77_v5, %v32_v11 }
   0x8   :  { %v44_v16 = vmul.f32 0.2, %v40_v12  ;;  %v45_v17 = vmul.f32 0.2, %v41_v13  ;;  %v46_v18 = vmul.f32 0.2, %v42_v14 }
   0x9   :  { %v47_v19 = vmul.f32 0.2, %v43_v15 }
   0xa   :  { %v48_v20 = vmax.f32 %v40_v12, %v44_v16  ;;  %v49_v21 = vmax.f32 %v41_v13, %v45_v17  ;;  %v50_v22 = vmax.f32 %v42_v14, %v46_v18 }
   0xb   :  { %v51_v23 = vmax.f32 %v43_v15, %v47_v19 }
   0xc   :  { %v97_v24 = vpack.c.bf16 %v49_v21, %v48_v20 }
   0xd   :  { %v102_v25 = vpack.c.bf16 %v51_v23, %v50_v22 }
   0xe   :  { %98 = vst [vmem:[%s147_s3] sm:$0xff] %v97_v24  }
   0xf   :  { %105 = vst [vmem:[%s147_s3 + $0x8] sm:$0xff] %v102_v25  }

// kernel: _lambda_.11
= control target key start
LH: loop header
LB: loop body
LE: loop exit
PB: predicated region body
PF: predicated region fallthrough
CT: control target
= control target key end

     0   :  { %s850_s1 = inlined_call_operand.vmem [shape: bf16[512,128], index: 1, kind: input, shape index: {}]   ;;  %s851_s0 = inlined_call_operand.vmem [shape: bf16[32,512], index: 0, kind: input, shape index: {}]   ;;  %s852_s2 = inlined_call_operand.vmem [shape: f32[1,128], index: 2, kind: input, shape index: {}]   ;;  %s853_s3 = inlined_call_operand.vmem [shape: f32[1,128], index: 3, kind: input, shape index: {}]   ;;  %s854_s4 = inlined_call_operand.vmem [shape: bf16[32,128], index: 4, kind: output, shape index: {0}]   ;;  %s855_s5 = inlined_call_operand.vmem [shape: f32[8,128], index: 5, kind: output, shape index: {1}]   ;;  %s856_s6 = inlined_call_operand.vmem [shape: f32[8,128], index: 6, kind: output, shape index: {2}]  }
   0x1   :  { %v633_v0 = vld [vmem:[%s850_s1 + $0x40] sm:$0xff]   ;;  %v637_v4 = vld [vmem:[%s850_s1 + $0x48] sm:$0xff]   ;;  %v641_v8 = vld [vmem:[%s850_s1 + $0x50] sm:$0xff]  }
   0x2   :  { %v634_v1 = vld [vmem:[%s850_s1 + $0xc0] sm:$0xff]   ;;  %577 = vmatprep.subr.bf16.mxu0 %v633_v0  ;;  %v638_v5 = vld [vmem:[%s850_s1 + $0xc8] sm:$0xff]   ;;  %v642_v9 = vld [vmem:[%s850_s1 + $0xd0] sm:$0xff]  }
   0x3   :  { %v635_v2 = vld [vmem:[%s850_s1] sm:$0xff]   ;;  %605 = vmatprep.subr.bf16.mxu1 %v634_v1  ;;  %v639_v6 = vld [vmem:[%s850_s1 + $0x8] sm:$0xff]   ;;  %v643_v10 = vld [vmem:[%s850_s1 + $0x10] sm:$0xff]  }
   0x4   :  { %v636_v3 = vld [vmem:[%s850_s1 + $0x80] sm:$0xff]   ;;  %578 = vmatpush3.bf16.msra.mxu0 %v635_v2  ;;  %v640_v7 = vld [vmem:[%s850_s1 + $0x88] sm:$0xff]   ;;  %v644_v11 = vld [vmem:[%s850_s1 + $0x90] sm:$0xff]  }
   0x5   :  { %606 = vmatpush3.bf16.msra.mxu1 %v636_v3  ;;  %579 = vmatprep.subr.bf16.mxu0 %v637_v4  ;;  %v645_v12 = vld [vmem:[%s850_s1 + $0x58] sm:$0xff]   ;;  %v649_v16 = vld [vmem:[%s850_s1 + $0x60] sm:$0xff]   ;;  %v653_v20 = vld [vmem:[%s850_s1 + $0x68] sm:$0xff]  }
   0x6   :  { %607 = vmatprep.subr.bf16.mxu1 %v638_v5  ;;  %v646_v13 = vld [vmem:[%s850_s1 + $0xd8] sm:$0xff]   ;;  %v650_v17 = vld [vmem:[%s850_s1 + $0xe0] sm:$0xff]   ;;  %v654_v21 = vld [vmem:[%s850_s1 + $0xe8] sm:$0xff]  }
   0x7   :  { %v647_v14 = vld [vmem:[%s850_s1 + $0x18] sm:$0xff]   ;;  %v651_v18 = vld [vmem:[%s850_s1 + $0x20] sm:$0xff]   ;;  %v655_v22 = vld [vmem:[%s850_s1 + $0x28] sm:$0xff]  }
   0x8   :  { %580 = vmatpush3.bf16.msra.mxu0 %v639_v6  ;;  %v648_v15 = vld [vmem:[%s850_s1 + $0x98] sm:$0xff]   ;;  %v652_v19 = vld [vmem:[%s850_s1 + $0xa0] sm:$0xff]   ;;  %v656_v23 = vld [vmem:[%s850_s1 + $0xa8] sm:$0xff]  }
   0x9   :  { %608 = vmatpush3.bf16.msra.mxu1 %v640_v7  ;;  %581 = vmatprep.subr.bf16.mxu0 %v641_v8  ;;  %v657_v24 = vld [vmem:[%s850_s1 + $0x70] sm:$0xff]   ;;  %v661_v28 = vld [vmem:[%s850_s1 + $0x78] sm:$0xff]   ;;  %v556_v49 = vld [vmem:[%s852_s2] ss:$0 sm:$0xff] }
   0xa   :  { %609 = vmatprep.subr.bf16.mxu1 %v642_v9  ;;  %v658_v25 = vld [vmem:[%s850_s1 + $0xf0] sm:$0xff]   ;;  %v662_v29 = vld [vmem:[%s850_s1 + $0xf8] sm:$0xff]   ;;  %v557_v54 = vld [vmem:[%s853_s3] ss:$0 sm:$0xff] }
   0xb   :  { %v659_v26 = vld [vmem:[%s850_s1 + $0x30] sm:$0xff]   ;;  %v663_v30 = vld [vmem:[%s850_s1 + $0x38] sm:$0xff]  }
   0xc   :  { %582 = vmatpush3.bf16.msra.mxu0 %v643_v10  ;;  %v660_v27 = vld [vmem:[%s850_s1 + $0xb0] sm:$0xff]   ;;  %v664_v31 = vld [vmem:[%s850_s1 + $0xb8] sm:$0xff]  }
   0xd   :  { %610 = vmatpush3.bf16.msra.mxu1 %v644_v11  ;;  %583 = vmatprep.subr.bf16.mxu0 %v645_v12  ;;  %v665_v32 = vld [vmem:[%s851_s0] ss:$16 sps:$4 sm:$0xff]   ;;  %v667_v33 = vld [vmem:[%s851_s0 + $0x4] ss:$16 sps:$4 sm:$0xff]   ;;  %v668_v34 = vld [vmem:[%s851_s0 + $0x8] ss:$16 sps:$4 sm:$0xff]  }
   0xe   :  { %611 = vmatprep.subr.bf16.mxu1 %v646_v13  ;;  %v670_v35 = vld [vmem:[%s851_s0 + $0xc] ss:$16 sps:$4 sm:$0xff]   ;;  %369 = vmatprep.mubr.bf16.mxu0 %v667_v33  ;;  %v671_v36 = vld [vmem:[%s851_s0 + $0x24] ss:$16 sps:$4 sm:$0xff]   ;;  %v675_v38 = vld [vmem:[%s851_s0 + $0x20] ss:$16 sps:$4 sm:$0xff]  }
   0xf   :  { %418 = vmatprep.mubr.bf16.mxu1 %v670_v35  ;;  %v673_v37 = vld [vmem:[%s851_s0 + $0x2c] ss:$16 sps:$4 sm:$0xff]   ;;  %v676_v39 = vld [vmem:[%s851_s0 + $0x28] ss:$16 sps:$4 sm:$0xff]  }
  0x10   :  { %584 = vmatpush3.bf16.msra.mxu0 %v647_v14 }
  0x11   :  { %612 = vmatpush3.bf16.msra.mxu1 %v648_v15  ;;  %585 = vmatprep.subr.bf16.mxu0 %v649_v16 }
  0x12   :  { %613 = vmatprep.subr.bf16.mxu1 %v650_v17 }
  0x14   :  { %586 = vmatpush3.bf16.msra.mxu0 %v651_v18 }
  0x15   :  { %614 = vmatpush3.bf16.msra.mxu1 %v652_v19  ;;  %587 = vmatprep.subr.bf16.mxu0 %v653_v20 }
  0x16   :  { %615 = vmatprep.subr.bf16.mxu1 %v654_v21 }
  0x18   :  { %588 = vmatpush3.bf16.msra.mxu0 %v655_v22 }
  0x19   :  { %616 = vmatpush3.bf16.msra.mxu1 %v656_v23  ;;  %589 = vmatprep.subr.bf16.mxu0 %v657_v24 }
  0x1a   :  { %617 = vmatprep.subr.bf16.mxu1 %v658_v25 }
  0x1c   :  { %590 = vmatpush3.bf16.msra.mxu0 %v659_v26 }
  0x1d   :  { %618 = vmatpush3.bf16.msra.mxu1 %v660_v27  ;;  %591 = vmatprep.subr.bf16.mxu0 %v661_v28 }
  0x1e   :  { %619 = vmatprep.subr.bf16.mxu1 %v662_v29 }
  0x20   :  { %592 = vmatpush3.bf16.msra.mxu0 %v663_v30 }
  0x21   :  { %620 = vmatpush3.bf16.msra.mxu1 %v664_v31 }
  0x23   :  { %370 = vmatmul.mubr.bf16.vlgmr.msra.gmra.mrb[0].mxu0 %v665_v32 }
  0x24   :  { %419 = vmatmul.mubr.bf16.vlgmr.msra.gmra.mrb[0].mxu1 %v668_v34  ;;  %377 = vmatprep.mubr.bf16.mxu0 %v671_v36 }
  0x25   :  { %426 = vmatprep.mubr.bf16.mxu1 %v673_v37 }
  0x2b   :  { %378 = vmatmul.mubr.bf16.gmra.mrb[4].mxu0 %v675_v38 }
  0x2c   :  { %427 = vmatmul.mubr.bf16.gmra.mrb[4].mxu1 %v676_v39 }
  0xf6   :  { %v593_v40 = vpop.f32.mrb[0].mxu0 }
  0xf7   :  { %v621_v41 = vpop.f32.mrb[0].mxu1  ;;  %v594_v42 = vpop.f32.mrb[1].mxu0 }
  0xf8   :  { %v595_v43 = vadd.f32 %v594_v42, %v593_v40  ;;  %v622_v44 = vpop.f32.mrb[1].mxu1  ;;  %v596_v45 = vpop.f32.mrb[2].mxu0 }
  0xf9   :  { %v623_v46 = vadd.f32 %v622_v44, %v621_v41  ;;  %v624_v47 = vpop.f32.mrb[2].mxu1  ;;  %v597_v48 = vpop.f32.mrb[3].mxu0 }
  0xfa   :  { %v598_v50 = vadd.f32 %v597_v48, %v596_v45  ;;  %v625_v51 = vpop.f32.mrb[3].mxu1 }
  0xfb   :  { %v421_v52 = vadd.f32 %v623_v46, %v595_v43  ;;  %v626_v53 = vadd.f32 %v625_v51, %v624_v47 }
  0xfd   :  { %v457_v55 = vmul.f32 %v556_v49, %v421_v52  ;;  %v424_v56 = vadd.f32 %v626_v53, %v598_v50 }
  0xfe   :  { %v599_v57 = vpop.f32.mrb[4].mxu0 }
  0xff   :  { %v468_v58 = vadd.f32 %v557_v54, %v457_v55  ;;  %v458_v59 = vmul.f32 %v556_v49, %v424_v56  ;;  %v627_v60 = vpop.f32.mrb[4].mxu1  ;;  %v600_v61 = vpop.f32.mrb[5].mxu0 }
 0x100   :  { %v601_v62 = vadd.f32 %v600_v61, %v599_v57  ;;  %v628_v63 = vpop.f32.mrb[5].mxu1  ;;  %v602_v0 = vpop.f32.mrb[6].mxu0 }
 0x101   :  { %v469_v1 = vadd.f32 %v557_v54, %v458_v59  ;;  %v629_v2 = vadd.f32 %v628_v63, %v627_v60  ;;  %v630_v3 = vpop.f32.mrb[6].mxu1  ;;  %v603_v4 = vpop.f32.mrb[7].mxu0  ;;  %v476_v5 = vmul.f32 %v468_v58, %v468_v58 }
 0x102   :  { %v604_v6 = vadd.f32 %v603_v4, %v602_v0  ;;  %v631_v7 = vpop.f32.mrb[7].mxu1 }
 0x103   :  { %v472_v8 = vadd.f32 %v469_v1, %v468_v58  ;;  %v477_v9 = vmul.f32 %v469_v1, %v469_v1  ;;  %v569_v10 = vpack.c.bf16 %v469_v1, %v468_v58  ;;  %v429_v11 = vadd.f32 %v629_v2, %v601_v62 }
 0x104   :  { %v632_v12 = vadd.f32 %v631_v7, %v630_v3 }
 0x105   :  { %v480_v13 = vadd.f32 %v477_v9, %v476_v5  ;;  %570 = vst [vmem:[%s854_s4] sm:$0xff] %v569_v10   ;;  %v459_v14 = vmul.f32 %v556_v49, %v429_v11 }
 0x106   :  { %v432_v15 = vadd.f32 %v632_v12, %v604_v6 }
 0x107   :  { %v470_v16 = vadd.f32 %v557_v54, %v459_v14 }
 0x108   :  { %v460_v17 = vmul.f32 %v556_v49, %v432_v15 }
 0x109   :  { %v473_v18 = vadd.f32 %v472_v8, %v470_v16  ;;  %v478_v19 = vmul.f32 %v470_v16, %v470_v16 }
 0x10a   :  { %v471_v20 = vadd.f32 %v557_v54, %v460_v17 }
 0x10b   :  { %v481_v21 = vadd.f32 %v480_v13, %v478_v19 }
 0x10c   :  { %v474_v22 = vadd.f32 %v473_v18, %v471_v20  ;;  %v479_v23 = vmul.f32 %v471_v20, %v471_v20  ;;  %v574_v24 = vpack.c.bf16 %v471_v20, %v470_v16 }
 0x10e   :  { %475 = vst [vmem:[%s855_s5] sm:$0xff] %v474_v22  ;;  %v482_v25 = vadd.f32 %v481_v21, %v479_v23  ;;  %576 = vst [vmem:[%s854_s4 + $0x8] sm:$0xff] %v574_v24  }
 0x110   :  { %483 = vst [vmem:[%s856_s6] sm:$0xff] %v482_v25 }

// kernel: _lambda_.14
= control target key start
LH: loop header
LB: loop body
LE: loop exit
PB: predicated region body
PF: predicated region fallthrough
CT: control target
= control target key end

     0   :  { %s121_s0 = inlined_call_operand.vmem [shape: bf16[24,128], index: 0, kind: input, shape index: {}]   ;;  %s122_s1 = inlined_call_operand.vmem [shape: f32[1,128], index: 1, kind: input, shape index: {}]   ;;  %s123_s2 = inlined_call_operand.vmem [shape: f32[1,128], index: 2, kind: input, shape index: {}]   ;;  %s124_s3 = inlined_call_operand.vmem [shape: bf16[24,128], index: 3, kind: output, shape index: {}]  }
   0x1   :  { %v75_v0 = vld [vmem:[%s121_s0] sm:$0xff]   ;;  %v16_v4 = vld [vmem:[%s121_s0 + $0x8] sm:$0xf] }
   0x2   :  { %v66_v1 = vld [vmem:[%s122_s1] ss:$0 sm:$0xff]  ;;  %v76_v2 = vunpack.c.l.bf16 %v75_v0  ;;  %v77_v3 = vunpack.c.h.bf16 %v75_v0  ;;  %v19_v6 = vunpack.c.l.bf16 %v16_v4 }
   0x3   :  { %v67_v5 = vld [vmem:[%s123_s2] ss:$0 sm:$0xff] }
   0x4   :  { %v27_v7 = vmul.f32 %v76_v2, %v66_v1  ;;  %v28_v8 = vmul.f32 %v77_v3, %v66_v1  ;;  %v29_v9 = vmul.f32 %v66_v1, %v19_v6 }
   0x6   :  { %v37_v10 = vadd.f32 %v67_v5, %v27_v7  ;;  %v38_v11 = vadd.f32 %v67_v5, %v28_v8  ;;  %v39_v12 = vadd.f32 %v67_v5, %v29_v9 }
   0x8   :  { %v40_v13 = vmul.f32 0.2, %v37_v10  ;;  %v41_v14 = vmul.f32 0.2, %v38_v11  ;;  %v42_v15 = vmul.f32 0.2, %v39_v12 }
   0xa   :  { %v43_v16 = vmax.f32 %v37_v10, %v40_v13  ;;  %v44_v17 = vmax.f32 %v38_v11, %v41_v14  ;;  %v45_v18 = vmax.f32 %v39_v12, %v42_v15 }
   0xc   :  { %v81_v19 = vpack.c.bf16 %v44_v17, %v43_v16  ;;  %v73_v20 = vpack.c.bf16 %v45_v18, %v45_v18 }
   0xe   :  { %82 = vst [vmem:[%s124_s3] sm:$0xff] %v81_v19   ;;  %61 = vst [vmem:[%s124_s3 + $0x8] sm:$0xf] %v73_v20 }

// kernel: _lambda_.13
= control target key start
LH: loop header
LB: loop body
LE: loop exit
PB: predicated region body
PF: predicated region fallthrough
CT: control target
= control target key end

     0   :  { %s1232_s21 = smov 0   ;;  %s1234_s22 = smov 0   ;;  %s1359_s0 = inlined_call_operand.vmem [shape: bf16[24,1024], index: 0, kind: input, shape index: {}]   ;;  %s1360_s1 = inlined_call_operand.vmem [shape: bf16[1024,128], index: 1, kind: input, shape index: {}]   ;;  %s1361_s2 = inlined_call_operand.vmem [shape: f32[1,128], index: 2, kind: input, shape index: {}]   ;;  %s1362_s3 = inlined_call_operand.vmem [shape: f32[1,128], index: 3, kind: input, shape index: {}]   ;;  %s1363_s4 = inlined_call_operand.vmem [shape: bf16[24,128], index: 4, kind: output, shape index: {0}]   ;;  %s1364_s5 = inlined_call_operand.vmem [shape: f32[8,128], index: 5, kind: output, shape index: {1}]   ;;  %s1365_s6 = inlined_call_operand.vmem [shape: f32[8,128], index: 6, kind: output, shape index: {2}]  }
   0x1   :  { %s1236_s23 = smov 0   ;;  %s1238_s24 = smov 0  }
   0x2   :  { %s1240_s25 = smov 0  }
   0x3 LB: > { %s26_s26 = sadd.s32 1, %s1190_s24  ;;  %p45_p1 = scmp.ne.s32.totalorder %s1182_s22, %s1178_s21  ;;  %s1194_s25 = sphi %s1240_s25, %s17_s25   ;;  %s1190_s24 = sphi %s1238_s24, %s1369_s24   ;;  %s1186_s23 = sphi %s1236_s23, %s1368_s23   ;;  %s1182_s22 = sphi %s1234_s22, %s1367_s22   ;;  %s1178_s21 = sphi %s1232_s21, %s1366_s21  }
   0x4   : > { %p27_p0 = scmp.ge.s32.totalorder %s26_s26, 2  ;;  %p46_p2 = scmp.eq.s32.totalorder %s1194_s25, 0 }
   0x5   : > { %s38_s28 = sadd.s32 1, %s1182_s22  ;;  %p947_p5 = scmp.ge.s32.totalorder %s1194_s25, 2 }
   0x6   : > { %s1371_s26 = smov (%p27_p0, %s26_s26), 0  ;;  %p47_p3 = por %p46_p2, %p45_p1 }
   0x7   : > { %s34_s27 = ssub.s32 %s1190_s24, %s1371_s26  ;;  %223 = sbr.rel (%p947_p5) target bundleno = 21 (0x15), region = 24 }
   0x8   : > { %p36_p4 = scmp.eq.s32.totalorder %s34_s27, 0 }
   0xa   : > { %s1267_s29 = scalar_select %p36_p4, %s1182_s22, %s38_s28  }
   0xe   : > { %226 = sbr.rel (!%p47_p3) target bundleno = 21 (0x15), region = 28  ;;  %s228_s30 = sand.u32 (%p47_p3), 1, %s1182_s22  }
   0xf   : > { %s1006_s7 = sshll.u32 (%p47_p3), %s1190_s24, 4  ;;  %s1071_s8 = smul.u32 (%p47_p3), 48, %s228_s30 }
  0x10   : > { %s236_s11 = scalar_lea.vmem (%p47_p3), %s1359_s0, %s1006_s7 }
  0x11   : > { %v249_v0 = vld [vmem:[%s236_s11] sm:$0xff] (%p47_p3)  ;;  %v251_v1 = vld [vmem:[%s236_s11 + $0x8] sm:$0xff] (%p47_p3)  ;;  %s230_s12 = scalar_lea.vmem (%p47_p3), [#allocation3], %s1071_s8 }
  0x12   : > { %v253_v2 = vld [vmem:[%s236_s11 + $0x20] sm:$0xff] (%p47_p3)  ;;  %v255_v3 = vld [vmem:[%s236_s11 + $0x28] sm:$0xff] (%p47_p3)  ;;  %250 = vst [vmem:[%s230_s12] sm:$0xff] (%p47_p3), %v249_v0  ;;  %252 = vst [vmem:[%s230_s12 + $0x8] sm:$0xff] (%p47_p3), %v251_v1 }
  0x13   : > { %v257_v4 = vld [vmem:[%s236_s11 + $0x40] sm:$0xff] (%p47_p3)  ;;  %v259_v5 = vld [vmem:[%s236_s11 + $0x48] sm:$0xff] (%p47_p3)  ;;  %254 = vst [vmem:[%s230_s12 + $0x10] sm:$0xff] (%p47_p3), %v253_v2  ;;  %256 = vst [vmem:[%s230_s12 + $0x18] sm:$0xff] (%p47_p3), %v255_v3 }
  0x14   : > { %258 = vst [vmem:[%s230_s12 + $0x20] sm:$0xff] (%p47_p3), %v257_v4  ;;  %260 = vst [vmem:[%s230_s12 + $0x28] sm:$0xff] (%p47_p3), %v259_v5 }
  0x15 PF: > { %p950_p6 = scmp.ge.s32.totalorder %s1194_s25, 1  ;;  %p274_p7 = scmp.lt.s32.totalorder %s1194_s25, 3 }
  0x17   : > { %p275_p8 = pnand %p950_p6, %p274_p7 }
  0x18   : > { %s281_s13 = sand.u32 (!%p275_p8), 1, %s1178_s21   ;;  %s951_s14 = sshll.u32 (!%p275_p8), %s1186_s23, 6 }
  0x19   : > { %278 = sbr.rel (%p275_p8) target bundleno = 318 (0x13e), region = 55  ;;  %p326_p9 = scmp.lt.s32.totalorder (!%p275_p8), %s951_s14, 127 }
  0x1a   : > { %s1072_s15 = smul.u32 (!%p275_p8), 48, %s281_s13  ;;  %p953_p10 = scmp.ne.s32.totalorder (!%p275_p8), %s1186_s23, 0 }
  0x1c   : > { %s1284_s20 = scalar_lea.vmem (!%p275_p8), [#allocation3], %s1072_s15 }
  0x20   : > { %s1373_s14 = smov (!%p326_p9, %s951_s14), 127  ;;  %349 = sbr.rel (%p953_p10) target bundleno = 39 (0x27), region = 63 }
  0x21   : > { %s952_s16 = sshll.u32 %s1373_s14, 2  ;;  %v1196_v6 = vmov (!%p953_p10), 0.0  }
  0x22   : > { %s1282_s19 = scalar_lea.vmem %s1360_s1, %s952_s16  ;;  %350 = vst [vmem:[#allocation2] sm:$0xff] (!%p953_p10), %v1196_v6  ;;  %351 = vst [vmem:[#allocation2 + $0x8] sm:$0xff] (!%p953_p10), %v1196_v6 }
  0x23   : > { %352 = vst [vmem:[#allocation2 + $0x10] sm:$0xff] (!%p953_p10), %v1196_v6 }
  0x27 PF: > { %v1114_v7 = vld [vmem:[%s1282_s19 + $0x40] sm:$0xff]   ;;  %v1118_v11 = vld [vmem:[%s1282_s19 + $0x48] sm:$0xff]   ;;  %v1122_v15 = vld [vmem:[%s1282_s19 + $0x50] sm:$0xff]   ;;  %p994_p11 = scmp.ne.s32.totalorder %s1186_s23, 1 }
  0x28   : > { %v1115_v8 = vld [vmem:[%s1282_s19 + $0xc0] sm:$0xff]   ;;  %1015 = vmatprep.subr.bf16.mxu0 %v1114_v7  ;;  %v1119_v12 = vld [vmem:[%s1282_s19 + $0xc8] sm:$0xff]   ;;  %v1123_v16 = vld [vmem:[%s1282_s19 + $0xd0] sm:$0xff]  }
  0x29   : > { %v1116_v9 = vld [vmem:[%s1282_s19] sm:$0xff]   ;;  %1043 = vmatprep.subr.bf16.mxu1 %v1115_v8  ;;  %v1120_v13 = vld [vmem:[%s1282_s19 + $0x8] sm:$0xff]   ;;  %v1124_v17 = vld [vmem:[%s1282_s19 + $0x10] sm:$0xff]  }
  0x2a   : > { %v1117_v10 = vld [vmem:[%s1282_s19 + $0x80] sm:$0xff]   ;;  %1016 = vmatpush3.bf16.msra.mxu0 %v1116_v9  ;;  %v1121_v14 = vld [vmem:[%s1282_s19 + $0x88] sm:$0xff]   ;;  %v1125_v18 = vld [vmem:[%s1282_s19 + $0x90] sm:$0xff]  }
  0x2b   : > { %1044 = vmatpush3.bf16.msra.mxu1 %v1117_v10  ;;  %1017 = vmatprep.subr.bf16.mxu0 %v1118_v11  ;;  %v1126_v19 = vld [vmem:[%s1282_s19 + $0x58] sm:$0xff]   ;;  %v1130_v23 = vld [vmem:[%s1282_s19 + $0x60] sm:$0xff]   ;;  %v1134_v27 = vld [vmem:[%s1282_s19 + $0x68] sm:$0xff]  }
  0x2c   : > { %1045 = vmatprep.subr.bf16.mxu1 %v1119_v12  ;;  %v1127_v20 = vld [vmem:[%s1282_s19 + $0xd8] sm:$0xff]   ;;  %v1131_v24 = vld [vmem:[%s1282_s19 + $0xe0] sm:$0xff]   ;;  %v1135_v28 = vld [vmem:[%s1282_s19 + $0xe8] sm:$0xff]  }
  0x2d   : > { %v1128_v21 = vld [vmem:[%s1282_s19 + $0x18] sm:$0xff]   ;;  %v1132_v25 = vld [vmem:[%s1282_s19 + $0x20] sm:$0xff]   ;;  %v1136_v29 = vld [vmem:[%s1282_s19 + $0x28] sm:$0xff]  }
  0x2e   : > { %1018 = vmatpush3.bf16.msra.mxu0 %v1120_v13  ;;  %v1129_v22 = vld [vmem:[%s1282_s19 + $0x98] sm:$0xff]   ;;  %v1133_v26 = vld [vmem:[%s1282_s19 + $0xa0] sm:$0xff]   ;;  %v1137_v30 = vld [vmem:[%s1282_s19 + $0xa8] sm:$0xff]  }
  0x2f   : > { %1046 = vmatpush3.bf16.msra.mxu1 %v1121_v14  ;;  %1019 = vmatprep.subr.bf16.mxu0 %v1122_v15  ;;  %v1138_v31 = vld [vmem:[%s1282_s19 + $0x70] sm:$0xff]   ;;  %v1142_v35 = vld [vmem:[%s1282_s19 + $0x78] sm:$0xff]   ;;  %v353_v58 = vld [vmem:[#allocation2] sm:$0xff] }
  0x30   : > { %1047 = vmatprep.subr.bf16.mxu1 %v1123_v16  ;;  %v1139_v32 = vld [vmem:[%s1282_s19 + $0xf0] sm:$0xff]   ;;  %v1143_v36 = vld [vmem:[%s1282_s19 + $0xf8] sm:$0xff]   ;;  %v354_v63 = vld [vmem:[#allocation2 + $0x8] sm:$0xff] }
  0x31   : > { %v1140_v33 = vld [vmem:[%s1282_s19 + $0x30] sm:$0xff]   ;;  %v1144_v37 = vld [vmem:[%s1282_s19 + $0x38] sm:$0xff]  }
  0x32   : > { %1020 = vmatpush3.bf16.msra.mxu0 %v1124_v17  ;;  %v1141_v34 = vld [vmem:[%s1282_s19 + $0xb0] sm:$0xff]   ;;  %v1145_v38 = vld [vmem:[%s1282_s19 + $0xb8] sm:$0xff]  }
  0x33   : > { %1048 = vmatpush3.bf16.msra.mxu1 %v1125_v18  ;;  %1021 = vmatprep.subr.bf16.mxu0 %v1126_v19  ;;  %v1146_v39 = vld [vmem:[%s1284_s20] ss:$16 sps:$4 sm:$0xff]   ;;  %v1148_v40 = vld [vmem:[%s1284_s20 + $0x4] ss:$16 sps:$4 sm:$0xff]   ;;  %v1149_v41 = vld [vmem:[%s1284_s20 + $0x8] ss:$16 sps:$4 sm:$0xff]  }
  0x34   : > { %1049 = vmatprep.subr.bf16.mxu1 %v1127_v20  ;;  %v1151_v42 = vld [vmem:[%s1284_s20 + $0xc] ss:$16 sps:$4 sm:$0xff]   ;;  %v360_v43 = vld [vmem:[%s1284_s20 + $0x20] sm:$0xff]  ;;  %684 = vmatprep.mubr.bf16.mxu0 %v1148_v40  ;;  %v995_v19 = vld [vmem:[%s1361_s2] ss:$0 sm:$0xff] (!%p994_p11) }
  0x35   : > { %v959_v44 = vcombine.high %v360_v43, %v360_v43  ;;  %v361_v45 = vld [vmem:[%s1284_s20 + $0x28] sm:$0xff]  ;;  %732 = vmatprep.mubr.bf16.mxu1 %v1151_v42  ;;  %v958_v47 = vcombine.low %v360_v43, %v360_v43 }
  0x36   : > { %1022 = vmatpush3.bf16.msra.mxu0 %v1128_v21  ;;  %v961_v46 = vcombine.high %v361_v45, %v361_v45  ;;  %v960_v48 = vcombine.low %v361_v45, %v361_v45  ;;  %v355_v12 = vld [vmem:[#allocation2 + $0x10] sm:$0xff]  ;;  %v996_v20 = vld [vmem:[%s1362_s3] ss:$0 sm:$0xff] (!%p994_p11) }
  0x37   : > { %1050 = vmatpush3.bf16.msra.mxu1 %v1129_v22  ;;  %1023 = vmatprep.subr.bf16.mxu0 %v1130_v23 }
  0x38   : > { %1051 = vmatprep.subr.bf16.mxu1 %v1131_v24 }
  0x3a   : > { %1024 = vmatpush3.bf16.msra.mxu0 %v1132_v25 }
  0x3b   : > { %1052 = vmatpush3.bf16.msra.mxu1 %v1133_v26  ;;  %1025 = vmatprep.subr.bf16.mxu0 %v1134_v27 }
  0x3c   : > { %1053 = vmatprep.subr.bf16.mxu1 %v1135_v28 }
  0x3e   : > { %1026 = vmatpush3.bf16.msra.mxu0 %v1136_v29 }
  0x3f   : > { %1054 = vmatpush3.bf16.msra.mxu1 %v1137_v30  ;;  %1027 = vmatprep.subr.bf16.mxu0 %v1138_v31 }
  0x40   : > { %1055 = vmatprep.subr.bf16.mxu1 %v1139_v32 }
  0x42   : > { %1028 = vmatpush3.bf16.msra.mxu0 %v1140_v33 }
  0x43   : > { %1056 = vmatpush3.bf16.msra.mxu1 %v1141_v34  ;;  %1029 = vmatprep.subr.bf16.mxu0 %v1142_v35 }
  0x44   : > { %1057 = vmatprep.subr.bf16.mxu1 %v1143_v36 }
  0x46   : > { %1030 = vmatpush3.bf16.msra.mxu0 %v1144_v37 }
  0x47   : > { %1058 = vmatpush3.bf16.msra.mxu1 %v1145_v38 }
  0x49   : > { %685 = vmatmul.mubr.bf16.vlgmr.msra.gmra.mrb[0].mxu0 %v1146_v39 }
  0x4a   : > { %733 = vmatmul.mubr.bf16.vlgmr.msra.gmra.mrb[0].mxu1 %v1149_v41  ;;  %692 = vmatprep.mubr.bf16.mxu0 %v959_v44 }
  0x4b   : > { %740 = vmatprep.mubr.bf16.mxu1 %v961_v46 }
  0x51   : > { %693 = vmatmul.mubr.bf16.gmra.mrb[4].mxu0 %v958_v47 }
  0x52   : > { %741 = vmatmul.mubr.bf16.gmra.mrb[4].mxu1 %v960_v48 }
 0x11c   : > { %v1031_v49 = vpop.f32.mrb[0].mxu0 }
 0x11d   : > { %v1059_v50 = vpop.f32.mrb[0].mxu1  ;;  %v1032_v51 = vpop.f32.mrb[1].mxu0 }
 0x11e   : > { %v1033_v52 = vadd.f32 %v1032_v51, %v1031_v49  ;;  %v1060_v53 = vpop.f32.mrb[1].mxu1  ;;  %v1034_v54 = vpop.f32.mrb[2].mxu0 }
 0x11f   : > { %v1061_v55 = vadd.f32 %v1060_v53, %v1059_v50  ;;  %v1062_v56 = vpop.f32.mrb[2].mxu1  ;;  %v1035_v57 = vpop.f32.mrb[3].mxu0 }
 0x120   : > { %v1036_v59 = vadd.f32 %v1035_v57, %v1034_v54  ;;  %v1063_v60 = vpop.f32.mrb[3].mxu1 }
 0x121   : > { %v735_v61 = vadd.f32 %v1061_v55, %v1033_v52  ;;  %v1064_v62 = vadd.f32 %v1063_v60, %v1062_v56 }
 0x123   : > { %v748_v0 = vadd.f32 %v735_v61, %v353_v58  ;;  %v738_v1 = vadd.f32 %v1064_v62, %v1036_v59 }
 0x124   : > { %v1037_v2 = vpop.f32.mrb[4].mxu0 }
 0x125   : > { %751 = vst [vmem:[#allocation2] sm:$0xff] %v748_v0  ;;  %v749_v3 = vadd.f32 %v738_v1, %v354_v63  ;;  %v1065_v4 = vpop.f32.mrb[4].mxu1  ;;  %v1038_v5 = vpop.f32.mrb[5].mxu0 }
 0x126   : > { %v1039_v6 = vadd.f32 %v1038_v5, %v1037_v2  ;;  %v1066_v7 = vpop.f32.mrb[5].mxu1  ;;  %v1040_v8 = vpop.f32.mrb[6].mxu0 }
 0x127   : > { %752 = vst [vmem:[#allocation2 + $0x8] sm:$0xff] %v749_v3  ;;  %v1067_v9 = vadd.f32 %v1066_v7, %v1065_v4  ;;  %v1068_v10 = vpop.f32.mrb[6].mxu1  ;;  %v1041_v11 = vpop.f32.mrb[7].mxu0  ;;  %757 = sbr.rel (%p994_p11) target bundleno = 318 (0x13e), region = 67 }
 0x128   : > { %v1069_v13 = vpop.f32.mrb[7].mxu1 }
 0x129   : > { %v743_v14 = vadd.f32 %v1067_v9, %v1039_v6 }
 0x12b   : > { %v750_v15 = vadd.f32 %v743_v14, %v355_v12 }
 0x12c   : > { %v758_v16 = vld [vmem:[#allocation2] sm:$0xff] (!%p994_p11) }
 0x12d   : > { %753 = vst [vmem:[#allocation2 + $0x10] sm:$0xff] %v750_v15  ;;  %v768_v21 = vmul.f32 (!%p994_p11), %v995_v19, %v758_v16 }
 0x12e   : > { %v759_v17 = vld [vmem:[#allocation2 + $0x8] sm:$0xff] }
 0x12f   : > { %v769_v22 = vmul.f32 %v995_v19, %v759_v17  ;;  %v778_v24 = vadd.f32 %v996_v20, %v768_v21 }
 0x131   : > { %v779_v25 = vadd.f32 %v996_v20, %v769_v22  ;;  %v784_v28 = vmul.f32 %v778_v24, %v778_v24 }
 0x133   : > { %v781_v27 = vadd.f32 %v779_v25, %v778_v24  ;;  %v785_v29 = vmul.f32 %v779_v25, %v779_v25  ;;  %v1013_v31 = vpack.c.bf16 %v779_v25, %v778_v24 }
 0x134   : > { %v760_v18 = vld [vmem:[#allocation2 + $0x10] sm:$0xff] }
 0x135   : > { %v770_v23 = vmul.f32 %v995_v19, %v760_v18  ;;  %v787_v34 = vadd.f32 %v785_v29, %v784_v28  ;;  %1014 = vst [vmem:[%s1363_s4] sm:$0xff] %v1013_v31  }
 0x137   : > { %v780_v26 = vadd.f32 %v996_v20, %v770_v23 }
 0x139   : > { %v786_v30 = vmul.f32 %v780_v26, %v780_v26  ;;  %v1009_v32 = vpack.c.bf16 %v780_v26, %v780_v26  ;;  %v782_v33 = vadd.f32 %v781_v27, %v780_v26 }
 0x13b   : > { %805 = vst [vmem:[%s1363_s4 + $0x8] sm:$0xf] %v1009_v32  ;;  %783 = vst [vmem:[%s1364_s5] sm:$0xff] %v782_v33  ;;  %v788_v35 = vadd.f32 %v787_v34, %v786_v30 }
 0x13d   : > { %789 = vst [vmem:[%s1365_s6] sm:$0xff] %v788_v35 }
 0x13e PF: > { %s17_s25 = sadd.s32 1, %s1194_s25   ;;  %s1366_s21 = smov %s1182_s22 }
 0x13f   : > { %p14_p12 = scmp.ge.s32.totalorder %s17_s25, 4   ;;  %s1367_s22 = smov %s1267_s29 }
 0x140   : > { %s1368_s23 = smov %s1190_s24  ;;  %s1369_s24 = smov %s1371_s26 }
 0x141   :  { %16 = sbr.rel (!%p14_p12) target bundleno = 3 (0x3), region = 129 }

// kernel: _lambda_.15
= control target key start
LH: loop header
LB: loop body
LE: loop exit
PB: predicated region body
PF: predicated region fallthrough
CT: control target
= control target key end

     0   :  { %s912_s15 = smov 0   ;;  %s914_s16 = smov 0   ;;  %s998_s0 = inlined_call_operand.vmem [shape: bf16[8,2048], index: 0, kind: input, shape index: {}]   ;;  %s999_s1 = inlined_call_operand.vmem [shape: bf16[2048,128], index: 1, kind: input, shape index: {}]   ;;  %s1000_s2 = inlined_call_operand.vmem [shape: f32[1,128], index: 2, kind: input, shape index: {}]   ;;  %s1001_s3 = inlined_call_operand.vmem [shape: f32[1,128], index: 3, kind: input, shape index: {}]   ;;  %s1002_s4 = inlined_call_operand.vmem [shape: f32[8,128], index: 4, kind: output, shape index: {}]  }
   0x1   :  { %s916_s17 = smov 0  }
   0x2 LB: > { %s23_s18 = sadd.s32 1, %s880_s16  ;;  %p709_p0 = scmp.ge.s32.totalorder %s884_s17, 1  ;;  %s884_s17 = sphi %s916_s17, %s14_s17   ;;  %s880_s16 = sphi %s914_s16, %s1004_s16   ;;  %s876_s15 = sphi %s912_s15, %s1003_s15  }
   0x3   : > { %p24_p1 = scmp.ge.s32.totalorder %s23_s18, 4  ;;  %p192_p2 = scmp.lt.s32.totalorder %s884_s17, 5 }
   0x5   : > { %s1006_s18 = smov (%p24_p1, %s23_s18), 0  ;;  %p193_p3 = pnand %p709_p0, %p192_p2 }
   0x6   : > { %s710_s19 = sshll.u32 (!%p193_p3), %s876_s15, 2  ;;  %s712_s20 = sshll.u32 (!%p193_p3), %s876_s15, 6 }
   0x7   : > { %196 = sbr.rel (%p193_p3) target bundleno = 291 (0x123), region = 36  ;;  %p229_p4 = scmp.lt.s32.totalorder (!%p193_p3), %s710_s19, 15 }
   0x8   : > { %p237_p5 = scmp.lt.s32.totalorder (!%p193_p3), %s712_s20, 255  ;;  %p714_p6 = scmp.ne.s32.totalorder (!%p193_p3), %s876_s15, 0 }
   0xe   : > { %s1008_s19 = smov (!%p229_p4, %s710_s19), 15  ;;  %s1010_s20 = smov (!%p237_p5, %s712_s20), 255 }
   0xf   : > { %s711_s21 = sshll.u32 %s1008_s19, 2  ;;  %s713_s25 = sshll.u32 %s1010_s20, 2  ;;  %v886_v0 = vmov (!%p714_p6), 0.0  }
  0x10   : > { %s937_s24 = scalar_lea.vmem %s998_s0, %s711_s21  ;;  %s942_s28 = scalar_lea.vmem %s999_s1, %s713_s25  ;;  %251 = vst [vmem:[#allocation2] sm:$0xff] (!%p714_p6), %v886_v0 }
  0x11   : > { %250 = sbr.rel (%p714_p6) target bundleno = 24 (0x18), region = 40 }
  0x18 PF: > { %v826_v1 = vld [vmem:[%s942_s28 + $0x40] sm:$0xff]   ;;  %v830_v5 = vld [vmem:[%s942_s28 + $0x48] sm:$0xff]   ;;  %v834_v9 = vld [vmem:[%s942_s28 + $0x50] sm:$0xff]   ;;  %p751_p7 = scmp.ne.s32.totalorder %s876_s15, 3 }
  0x19   : > { %v827_v2 = vld [vmem:[%s942_s28 + $0xc0] sm:$0xff]   ;;  %757 = vmatprep.subr.bf16.mxu0 %v826_v1  ;;  %v831_v6 = vld [vmem:[%s942_s28 + $0xc8] sm:$0xff]   ;;  %v835_v10 = vld [vmem:[%s942_s28 + $0xd0] sm:$0xff]  }
  0x1a   : > { %v828_v3 = vld [vmem:[%s942_s28] sm:$0xff]   ;;  %779 = vmatprep.subr.bf16.mxu1 %v827_v2  ;;  %v832_v7 = vld [vmem:[%s942_s28 + $0x8] sm:$0xff]   ;;  %v836_v11 = vld [vmem:[%s942_s28 + $0x10] sm:$0xff]  }
  0x1b   : > { %v829_v4 = vld [vmem:[%s942_s28 + $0x80] sm:$0xff]   ;;  %758 = vmatpush3.bf16.msra.mxu0 %v828_v3  ;;  %v833_v8 = vld [vmem:[%s942_s28 + $0x88] sm:$0xff]   ;;  %v837_v12 = vld [vmem:[%s942_s28 + $0x90] sm:$0xff]  }
  0x1c   : > { %780 = vmatpush3.bf16.msra.mxu1 %v829_v4  ;;  %759 = vmatprep.subr.bf16.mxu0 %v830_v5  ;;  %v838_v13 = vld [vmem:[%s942_s28 + $0x58] sm:$0xff]   ;;  %v842_v17 = vld [vmem:[%s942_s28 + $0x60] sm:$0xff]   ;;  %v846_v21 = vld [vmem:[%s942_s28 + $0x68] sm:$0xff]  }
  0x1d   : > { %781 = vmatprep.subr.bf16.mxu1 %v831_v6  ;;  %v839_v14 = vld [vmem:[%s942_s28 + $0xd8] sm:$0xff]   ;;  %v843_v18 = vld [vmem:[%s942_s28 + $0xe0] sm:$0xff]   ;;  %v847_v22 = vld [vmem:[%s942_s28 + $0xe8] sm:$0xff]  }
  0x1e   : > { %v840_v15 = vld [vmem:[%s942_s28 + $0x18] sm:$0xff]   ;;  %v844_v19 = vld [vmem:[%s942_s28 + $0x20] sm:$0xff]   ;;  %v848_v23 = vld [vmem:[%s942_s28 + $0x28] sm:$0xff]  }
  0x1f   : > { %760 = vmatpush3.bf16.msra.mxu0 %v832_v7  ;;  %v841_v16 = vld [vmem:[%s942_s28 + $0x98] sm:$0xff]   ;;  %v845_v20 = vld [vmem:[%s942_s28 + $0xa0] sm:$0xff]   ;;  %v849_v24 = vld [vmem:[%s942_s28 + $0xa8] sm:$0xff]  }
  0x20   : > { %782 = vmatpush3.bf16.msra.mxu1 %v833_v8  ;;  %761 = vmatprep.subr.bf16.mxu0 %v834_v9  ;;  %v850_v25 = vld [vmem:[%s942_s28 + $0x70] sm:$0xff]   ;;  %v854_v29 = vld [vmem:[%s942_s28 + $0x78] sm:$0xff]   ;;  %v253_v33 = vld [vmem:[%s937_s24] sm:$0xff] }
  0x21   : > { %783 = vmatprep.subr.bf16.mxu1 %v835_v10  ;;  %v851_v26 = vld [vmem:[%s942_s28 + $0xf0] sm:$0xff]   ;;  %v855_v30 = vld [vmem:[%s942_s28 + $0xf8] sm:$0xff]   ;;  %v254_v34 = vld [vmem:[%s937_s24 + $0x8] sm:$0xff]  ;;  %v715_v35 = vcombine.low %v253_v33, %v253_v33  ;;  %v716_v36 = vcombine.high %v253_v33, %v253_v33 }
  0x22   : > { %v852_v27 = vld [vmem:[%s942_s28 + $0x30] sm:$0xff]   ;;  %v856_v31 = vld [vmem:[%s942_s28 + $0x38] sm:$0xff]   ;;  %v717_v37 = vcombine.low %v254_v34, %v254_v34  ;;  %v718_v38 = vcombine.high %v254_v34, %v254_v34  ;;  %v252_v47 = vld [vmem:[#allocation2] sm:$0xff] }
  0x23   : > { %762 = vmatpush3.bf16.msra.mxu0 %v836_v11  ;;  %v853_v28 = vld [vmem:[%s942_s28 + $0xb0] sm:$0xff]   ;;  %v857_v32 = vld [vmem:[%s942_s28 + $0xb8] sm:$0xff]   ;;  %557 = vmatprep.mubr.bf16.mxu0 %v716_v36  ;;  %v752_v53 = vld [vmem:[%s1000_s2] ss:$0 sm:$0xff] (!%p751_p7) }
  0x24   : > { %784 = vmatpush3.bf16.msra.mxu1 %v837_v12  ;;  %763 = vmatprep.subr.bf16.mxu0 %v838_v13  ;;  %v753_v54 = vld [vmem:[%s1001_s3] ss:$0 sm:$0xff] (!%p751_p7) }
  0x25   : > { %785 = vmatprep.subr.bf16.mxu1 %v839_v14  ;;  %597 = vmatprep.mubr.bf16.mxu1 %v718_v38 }
  0x27   : > { %764 = vmatpush3.bf16.msra.mxu0 %v840_v15 }
  0x28   : > { %786 = vmatpush3.bf16.msra.mxu1 %v841_v16  ;;  %765 = vmatprep.subr.bf16.mxu0 %v842_v17 }
  0x29   : > { %787 = vmatprep.subr.bf16.mxu1 %v843_v18 }
  0x2b   : > { %766 = vmatpush3.bf16.msra.mxu0 %v844_v19 }
  0x2c   : > { %788 = vmatpush3.bf16.msra.mxu1 %v845_v20  ;;  %767 = vmatprep.subr.bf16.mxu0 %v846_v21 }
  0x2d   : > { %789 = vmatprep.subr.bf16.mxu1 %v847_v22 }
  0x2f   : > { %768 = vmatpush3.bf16.msra.mxu0 %v848_v23 }
  0x30   : > { %790 = vmatpush3.bf16.msra.mxu1 %v849_v24  ;;  %769 = vmatprep.subr.bf16.mxu0 %v850_v25 }
  0x31   : > { %791 = vmatprep.subr.bf16.mxu1 %v851_v26 }
  0x33   : > { %770 = vmatpush3.bf16.msra.mxu0 %v852_v27 }
  0x34   : > { %792 = vmatpush3.bf16.msra.mxu1 %v853_v28  ;;  %771 = vmatprep.subr.bf16.mxu0 %v854_v29 }
  0x35   : > { %793 = vmatprep.subr.bf16.mxu1 %v855_v30 }
  0x37   : > { %772 = vmatpush3.bf16.msra.mxu0 %v856_v31 }
  0x38   : > { %794 = vmatpush3.bf16.msra.mxu1 %v857_v32 }
  0x3a   : > { %558 = vmatmul.mubr.bf16.vlgmr.msra.gmra.mrb[0].mxu0 %v715_v35 }
  0x3b   : > { %598 = vmatmul.mubr.bf16.vlgmr.msra.gmra.mrb[0].mxu1 %v717_v37 }
 0x10d   : > { %v773_v39 = vpop.f32.mrb[0].mxu0 }
 0x10e   : > { %v795_v40 = vpop.f32.mrb[0].mxu1  ;;  %v774_v41 = vpop.f32.mrb[1].mxu0 }
 0x10f   : > { %v796_v42 = vpop.f32.mrb[1].mxu1  ;;  %v775_v43 = vadd.f32 %v774_v41, %v773_v39  ;;  %v776_v45 = vpop.f32.mrb[2].mxu0 }
 0x110   : > { %v797_v44 = vadd.f32 %v796_v42, %v795_v40  ;;  %v798_v46 = vpop.f32.mrb[2].mxu1  ;;  %v777_v48 = vpop.f32.mrb[3].mxu0  ;;  %610 = sbr.rel (%p751_p7) target bundleno = 291 (0x123), region = 44 }
 0x111   : > { %v799_v49 = vpop.f32.mrb[3].mxu1 }
 0x112   : > { %v600_v50 = vadd.f32 %v797_v44, %v775_v43 }
 0x114   : > { %v605_v51 = vadd.f32 %v600_v50, %v252_v47 }
 0x116   : > { %606 = vst [vmem:[#allocation2] sm:$0xff] %v605_v51 }
 0x11d   : > { %v611_v52 = vld [vmem:[#allocation2] sm:$0xff] }
 0x11e   : > { %v619_v55 = vmul.f32 %v752_v53, %v611_v52 }
 0x120   : > { %v627_v56 = vadd.f32 %v753_v54, %v619_v55 }
 0x122   : > { %628 = vst [vmem:[%s1002_s4] sm:$0xff] %v627_v56 }
 0x123 PF: > { %s14_s17 = sadd.s32 1, %s884_s17   ;;  %s1003_s15 = smov %s880_s16 }
 0x124   : > { %p11_p8 = scmp.ge.s32.totalorder %s14_s17, 6   ;;  %s1004_s16 = smov %s1006_s18 }
 0x126   :  { %13 = sbr.rel (!%p11_p8) target bundleno = 2 (0x2), region = 77 }

</bundles_post_ra>
